<compile_context>
chip_gen: v6e
topology: v6e:2x2x1
jax: 0.10.0
libtpu: 0.0.40
codegen_flags: <defaults>
</compile_context>

<pallas_src>
import functools
import math

import jax
import jax.numpy as jnp
from jax.experimental import pallas as pl
from jax.experimental.pallas import tpu as pltpu

BN_EPS = 1e-5
VMEM_LIMIT_BYTES = 32 * 1024 * 1024   # explicit scoped-VMEM budget (ok on v5e/v6e/v7x)


def _ceil8(c):
    return -(-c // 8) * 8


# ----------------------------- Pallas kernels ------------------------------

def _conv_fused_kernel(p_ref, w_ref, b_ref, o_ref, *, relu):
    """out = [relu]( W_aug @ P_aug + shift ), stored bf16, lane-dense.

    W_aug already carries the post-conv BN scale (folded in f32) and, when a
    PyramidNet residual is present, an identity block whose patch rows are the
    shortcut activation — so BN, residual add and conv are one MXU GEMM.
    """
    acc = jnp.dot(w_ref[...], p_ref[...], preferred_element_type=jnp.float32)
    y = acc + b_ref[...]                       # f32 epilogue (v5e-safe)
    if relu:
        y = jnp.maximum(y, 0.0)
    o_ref[...] = y.astype(o_ref.dtype)         # cast to bf16 only at the store


def _tail_kernel(x_ref, s_ref, b_ref, pool_ref, wt_ref, bias_ref,
                 feat_ref, logit_ref):
    """Fused bn_final + ReLU + global avg-pool (as a matmul) + fc."""
    y = jnp.maximum(x_ref[...].astype(jnp.float32) * s_ref[...] + b_ref[...],
                    0.0)                                            # (Cp, M) f32
    feat = jnp.dot(y.astype(jnp.bfloat16), pool_ref[...],
                   preferred_element_type=jnp.float32)              # (Cp, N)
    feat_ref[...] = feat
    logit_ref[...] = jnp.dot(wt_ref[...], feat.astype(jnp.bfloat16),
                             preferred_element_type=jnp.float32) + bias_ref[...]


# ------------------------------ op wrappers ---------------------------------

def _bn_scale_shift(bn):
    scale = bn["gamma"] / jnp.sqrt(bn["var"] + BN_EPS)
    shift = bn["beta"] - bn["mean"] * scale
    return scale, shift


def _m_tile(m):
    """Largest multiple-of-128 divisor of m that still gives grid >= 2
    (keeps lane width >= 128 and lets v7x shard the parallel axis); falls
    back to a single full-width block otherwise."""
    tm = m
    t = 128
    while t <= min(m // 2, 2048):
        if m % t == 0:
            tm = t
        t += 128
    return tm


def conv_bn(x, conv, bn_out, *, stride=1, padding=0, relu=False,
            bn_in=None, residual=None):
    """Fused conv + BN (+ReLU) (+PyramidNet residual add), one GEMM.

    x:        (Cp_in, N, H, W), pad channels (rows >= conv['cin']) exactly 0.
    residual: (Cs_p, N, Ho, Wo) bf16 or None — added into the first Cs_p out
              channels via an identity block appended to the GEMM.
    returns   (Cp_out, N, Ho, Wo) bf16, pad channels exactly 0.
    """
    Cp_in, N, H, W = x.shape
    cin, cout = conv["cin"], conv["cout"]
    kh, kw = conv["kh"], conv["kw"]
    assert Cp_in == _ceil8(cin), (Cp_in, cin)
    Cp_out = _ceil8(cout)
    Ho = (H + 2 * padding - kh) // stride + 1
    Wo = (W + 2 * padding - kw) // stride + 1
    M = N * Ho * Wo

    # --- XLA glue (fused under jit): optional pre-conv BN affine + im2col ---
    xf = x.astype(jnp.float32)
    if bn_in is not None:
        s_in, b_in = _bn_scale_shift(bn_in)            # (cin,)
        s_in = jnp.pad(s_in, (0, Cp_in - cin))         # pad rows stay exactly 0
        b_in = jnp.pad(b_in, (0, Cp_in - cin))
        xf = xf * s_in[:, None, None, None] + b_in[:, None, None, None]

    if kh == 1 and kw == 1 and stride == 1 and padding == 0:
        p = xf.reshape(Cp_in, M)
    else:
        xp = jnp.pad(xf, ((0, 0), (0, 0), (padding, padding), (padding, padding)))
        cols = []
        for i in range(kh):
            for j in range(kw):
                sl = xp[:, :, i:i + stride * (Ho - 1) + 1:stride,
                        j:j + stride * (Wo - 1) + 1:stride]
                cols.append(sl.reshape(Cp_in, M))
        p = jnp.concatenate(cols, axis=0)              # (kh*kw*Cp_in, M) tap-major
    p = p.astype(jnp.bfloat16)

    # --- weight prep: fold post-conv BN scale (f32), pad channels, GEMM layout ---
    s_out, b_out = _bn_scale_shift(bn_out)             # (cout,)
    w4 = conv["w"] * s_out[:, None, None, None]        # (cout, cin, kh, kw) f32
    wt = jnp.transpose(w4, (2, 3, 1, 0))               # (kh, kw, cin, cout)
    wt = jnp.pad(wt, ((0, 0), (0, 0), (0, Cp_in - cin), (0, Cp_out - cout)))
    w_gemm = wt.reshape(kh * kw * Cp_in, Cp_out).T     # (Cp_out, K), tap-major cols
    shift = jnp.pad(b_out, (0, Cp_out - cout)).reshape(Cp_out, 1)  # f32

    if residual is not None:                           # fold residual into the GEMM
        residual = residual.astype(jnp.bfloat16)
        Cs_p = residual.shape[0]
        w_gemm = jnp.concatenate(
            [w_gemm, jnp.eye(Cp_out, Cs_p, dtype=w_gemm.dtype)], axis=1)
        p = jnp.concatenate([p, residual.reshape(Cs_p, M)], axis=0)
    w_bf = w_gemm.astype(jnp.bfloat16)
    K_aug = p.shape[0]

    TM = _m_tile(M)
    out = pl.pallas_call(
        functools.partial(_conv_fused_kernel, relu=relu),
        out_shape=jax.ShapeDtypeStruct((Cp_out, M), jnp.bfloat16),
        grid=(M // TM,),
        in_specs=[
            pl.BlockSpec((K_aug, TM), lambda m: (0, m)),      # patches (+ residual)
            pl.BlockSpec((Cp_out, K_aug), lambda m: (0, 0)),  # weight, resident
            pl.BlockSpec((Cp_out, 1), lambda m: (0, 0)),      # BN shift
        ],
        out_specs=pl.BlockSpec((Cp_out, TM), lambda m: (0, m)),
        compiler_params=pltpu.CompilerParams(
            dimension_semantics=("parallel",),
            vmem_limit_bytes=VMEM_LIMIT_BYTES),
    )(p, w_bf, shift)
    return out.reshape(Cp_out, N, Ho, Wo)


def avgpool2x2(x):
    # Shortcut 2x2/stride-2 avg pool: plain-XLA layout plumbing (fused by jit).
    C, N, H, W = x.shape
    y = x.astype(jnp.float32).reshape(C, N, H // 2, 2, W // 2, 2).mean(axis=(3, 5))
    return y.astype(jnp.bfloat16)


# --------------------------- parameters / model ------------------------------

def _conv_params(key, kh, kw, cin, cout):
    # nn.Conv2d init in pResNet.__init__: normal(0, sqrt(2 / (kh*kw*cout))).
    # Stored in PyTorch (Cout, Cin, KH, KW) layout; permuted to the tap-major
    # GEMM layout at prep time (so a ported checkpoint maps 1:1).
    std = math.sqrt(2.0 / (kh * kw * cout))
    w = std * jax.random.normal(key, (cout, cin, kh, kw), jnp.float32)
    return dict(w=w, kh=kh, kw=kw, cin=cin, cout=cout)


def _bn_params(c):
    return dict(gamma=jnp.ones((c,), jnp.float32),
                beta=jnp.zeros((c,), jnp.float32),
                mean=jnp.zeros((c,), jnp.float32),
                var=jnp.ones((c,), jnp.float32))


def _basic_block_params(key, inplanes, planes, stride, downsample):
    k1, k2 = jax.random.split(key)
    return dict(kind="basic", stride=stride, downsample=downsample,
                bn1=_bn_params(inplanes),
                conv1=_conv_params(k1, 3, 3, inplanes, planes),
                bn2=_bn_params(planes),
                conv2=_conv_params(k2, 3, 3, planes, planes),
                bn3=_bn_params(planes))


def _bottleneck_params(key, inplanes, planes, stride, downsample):
    k1, k2, k3 = jax.random.split(key, 3)
    ks = 8 if stride == 2 else 7
    return dict(kind="bottleneck", stride=stride, downsample=downsample,
                ksize=ks,
                bn1=_bn_params(inplanes),
                conv1=_conv_params(k1, 1, 1, inplanes, planes),
                bn2=_bn_params(planes),
                conv2=_conv_params(k2, ks, ks, planes, planes),
                bn3=_bn_params(planes),
                conv3=_conv_params(k3, 1, 1, planes, planes * 4),
                bn4=_bn_params(planes * 4))


def _basic_block_forward(p, x):
    # bn1 applied in conv1's glue; bn2+ReLU fused into conv1's epilogue.
    t = conv_bn(x, p["conv1"], p["bn2"], stride=p["stride"], padding=1,
                relu=True, bn_in=p["bn1"])
    shortcut = avgpool2x2(x) if p["downsample"] else x
    # conv2 + bn3 + residual add, all inside one GEMM.
    return conv_bn(t, p["conv2"], p["bn3"], stride=1, padding=1,
                   relu=False, residual=shortcut)


def _bottleneck_forward(p, x):
    t = conv_bn(x, p["conv1"], p["bn2"], stride=1, padding=0, relu=True,
                bn_in=p["bn1"])
    t = conv_bn(t, p["conv2"], p["bn3"], stride=p["stride"], padding=3,
                relu=True)
    shortcut = avgpool2x2(x) if p["downsample"] else x
    return conv_bn(t, p["conv3"], p["bn4"], stride=1, padding=0,
                   relu=False, residual=shortcut)


def init_presnet(key, depth, alpha, num_classes, n_bands, inplanes,
                 bottleneck=False):
    if bottleneck:
        n = (depth - 2) // 9
        ratio, make_block = 4, _bottleneck_params
    else:
        n = (depth - 2) // 6
        ratio, make_block = 1, _basic_block_params
    addrate = alpha / (3.0 * n)

    keys = jax.random.split(key, 4)
    params = {"bottleneck": bottleneck}
    params["conv1"] = _conv_params(keys[0], 3, 3, n_bands, inplanes)
    params["bn1"] = _bn_params(inplanes)

    state = dict(featuremap_dim=float(inplanes), input_dim=inplanes)
    block_keys = iter(jax.random.split(keys[1], 3 * n))

    def make_layer(block_depth, stride):
        blocks = []
        state["featuremap_dim"] += addrate
        planes = int(round(state["featuremap_dim"]))
        blocks.append(make_block(next(block_keys), state["input_dim"],
                                 planes, stride, stride != 1))
        for _ in range(1, block_depth):
            temp = state["featuremap_dim"] + addrate
            blocks.append(make_block(next(block_keys),
                                     int(round(state["featuremap_dim"])) * ratio,
                                     int(round(temp)), 1, False))
            state["featuremap_dim"] = temp
        state["input_dim"] = int(round(state["featuremap_dim"])) * ratio
        return blocks

    params["layer1"] = make_layer(n, 1)
    params["layer2"] = make_layer(n, 2)
    params["layer3"] = make_layer(n, 2)

    final_dim = state["input_dim"]
    params["bn_final"] = _bn_params(final_dim)
    # nn.Linear keeps its default init (untouched by the custom init loop).
    bound = 1.0 / math.sqrt(final_dim)
    kw_, kb_ = jax.random.split(keys[2])
    params["fc_w"] = jax.random.uniform(kw_, (num_classes, final_dim),
                                        jnp.float32, -bound, bound)
    params["fc_b"] = jax.random.uniform(kb_, (num_classes,),
                                        jnp.float32, -bound, bound)
    params["final_dim"] = final_dim
    return params


def presnet_forward(params, x_nchw, avgpoosize):
    # Channel-major (C, N, H, W) layout: M = N*H*W sits on the 128-lane axis of
    # every Pallas block; channel dims padded to multiples of 8 throughout.
    n_bands = params["conv1"]["cin"]
    Cp0 = _ceil8(n_bands)
    x = jnp.transpose(x_nchw, (1, 0, 2, 3)).astype(jnp.float32)
    x = jnp.pad(x, ((0, Cp0 - n_bands), (0, 0), (0, 0), (0, 0)))

    block_fwd = (_bottleneck_forward if params["bottleneck"]
                 else _basic_block_forward)

    # Stem conv1 + bn1 fused (scale folded into W, shift in the epilogue).
    x = conv_bn(x, params["conv1"], params["bn1"], stride=1, padding=1,
                relu=False)
    for layer in ("layer1", "layer2", "layer3"):
        for bp in params[layer]:
            x = block_fwd(bp, x)

    # Fused tail: bn_final + ReLU + AvgPool2d(avgpoosize) + flatten + fc.
    Cp, N, H, W = x.shape
    C = params["final_dim"]
    # TODO(synk): non-global AvgPool2d tails (pooled spatial > 1x1) are not
    # supported; the reference fc (in_features=final_dim) requires 1x1 anyway.
    assert H == avgpoosize and W == avgpoosize, (H, W, avgpoosize)
    HW = H * W
    M = N * HW
    scale, shift = _bn_scale_shift(params["bn_final"])
    scale = jnp.pad(scale, (0, Cp - C)).reshape(Cp, 1)
    shift = jnp.pad(shift, (0, Cp - C)).reshape(Cp, 1)
    # Global average pooling expressed as an (M, N) matmul -> single tail kernel.
    pool_mat = jnp.kron(jnp.eye(N, dtype=jnp.float32),
                        jnp.full((HW, 1), 1.0 / HW, jnp.float32)
                        ).astype(jnp.bfloat16)
    num_classes = params["fc_w"].shape[0]
    fc_w = jnp.pad(params["fc_w"], ((0, 0), (0, Cp - C))).astype(jnp.bfloat16)

    feat_cn, logits_cn = pl.pallas_call(
        _tail_kernel,
        out_shape=(jax.ShapeDtypeStruct((Cp, N), jnp.float32),
                   jax.ShapeDtypeStruct((num_classes, N), jnp.float32)),
    )(x.reshape(Cp, M), scale, shift, pool_mat, fc_w,
      params["fc_b"].reshape(num_classes, 1))

    feat = feat_cn[:C].T      # drop channel padding == x.view(N, -1) of reference
    logits = logits_cn.T
    return feat, logits


# ---------------------------------- main -------------------------------------

if __name__ == "__main__":
    key = jax.random.PRNGKey(0)
    kp, kx = jax.random.split(key)

    # pResNet(depth=8, alpha=6, num_classes=5, n_bands=4, avgpoosize=4,
    #         inplanes=4, bottleneck=False)  -> 1 BasicBlock per stage,
    #         channels 4 -> 6 -> 8 -> 10, spatial 16 -> 16 -> 8 -> 4 -> 1.
    params = init_presnet(kp, depth=8, alpha=6.0, num_classes=5,
                          n_bands=4, inplanes=4, bottleneck=False)

    x = jax.random.normal(kx, (2, 4, 16, 16), jnp.float32)  # NCHW like PyTorch

    # jit the whole forward (params captured as constants -> XLA fuses all the
    # im2col / weight-prep glue and folds the BN/residual weight augmentation).
    forward = jax.jit(functools.partial(presnet_forward, params, avgpoosize=4))
    feat, logits = forward(x)
    jax.block_until_ready((feat, logits))

    assert feat.shape == (2, params["final_dim"]), feat.shape
    assert logits.shape == (2, 5), logits.shape
    print("KERNEL_OK")
</pallas_src>

<mosaic_0001>
module attributes {stable_mosaic.version = 11 : i64} {
  func.func @_conv_fused_kernel(%arg0: i32, %arg1: memref<72x256xbf16, #tpu.memory_space<vmem>>, %arg2: memref<8x72xbf16, #tpu.memory_space<vmem>>, %arg3: memref<8x1xf32, #tpu.memory_space<vmem>>, %arg4: memref<8x256xbf16, #tpu.memory_space<vmem>>) attributes {dimension_semantics = [#tpu.dimension_semantics<parallel>], iteration_bounds = array<i64: 2>, scalar_prefetch = 0 : i64, scratch_operands = 0 : i64, tpu.core_type = #tpu.core_type<tc>, window_params = [{transform_indices = @transform_0, window_bounds = array<i64: 72, 256>}, {pipeline_mode = #tpu.pipeline_mode<synchronous>, transform_indices = @transform_1, window_bounds = array<i64: 8, 72>}, {pipeline_mode = #tpu.pipeline_mode<synchronous>, transform_indices = @transform_2, window_bounds = array<i64: 8, 1>}, {transform_indices = @transform_3, window_bounds = array<i64: 8, 256>}]} {
    %c0 = arith.constant 0 : index
    %c0_0 = arith.constant 0 : index
    %0 = vector.load %arg2[%c0, %c0_0] : memref<8x72xbf16, #tpu.memory_space<vmem>>, vector<8x72xbf16>
    %c0_1 = arith.constant 0 : index
    %c0_2 = arith.constant 0 : index
    %1 = vector.load %arg1[%c0_1, %c0_2] : memref<72x256xbf16, #tpu.memory_space<vmem>>, vector<72x256xbf16>
    %cst = arith.constant dense<0.000000e+00> : vector<8x256xf32>
    %2 = tpu.matmul %0, %1, %cst {dimension_numbers = #tpu.dot_dimension_numbers<[1], [0], [0], [1], [0, 0, 1, 1], [], []>} : vector<8x72xbf16>, vector<72x256xbf16>, vector<8x256xf32> -> vector<8x256xf32>
    %c0_3 = arith.constant 0 : index
    %c0_4 = arith.constant 0 : index
    %3 = vector.load %arg3[%c0_3, %c0_4] : memref<8x1xf32, #tpu.memory_space<vmem>>, vector<8x1xf32>
    %4 = vector.broadcast %3 : vector<8x1xf32> to vector<8x256xf32>
    %5 = arith.addf %2, %4 : vector<8x256xf32>
    %6 = arith.truncf %5 : vector<8x256xf32> to vector<8x256xbf16>
    %c0_5 = arith.constant 0 : index
    %c0_6 = arith.constant 0 : index
    %7 = vector.load %arg4[%c0_5, %c0_6] : memref<8x256xbf16, #tpu.memory_space<vmem>>, vector<8x256xbf16>
    tpu.vector_store %arg4[%c0_5, %c0_6], %6 {strides = array<i32>} : memref<8x256xbf16, #tpu.memory_space<vmem>>, vector<8x256xbf16>,
    return
  }
  func.func @transform_0(%arg0: i32) -> (i32, i32) {
    %c0_i32 = arith.constant 0 : i32
    %c0_i32_0 = arith.constant 0 : i32
    return %c0_i32, %arg0 : i32, i32
  }
  func.func @transform_1(%arg0: i32) -> (i32, i32) {
    %c0_i32 = arith.constant 0 : i32
    %c0_i32_0 = arith.constant 0 : i32
    %c0_i32_1 = arith.constant 0 : i32
    return %c0_i32, %c0_i32_0 : i32, i32
  }
  func.func @transform_2(%arg0: i32) -> (i32, i32) {
    %c0_i32 = arith.constant 0 : i32
    %c0_i32_0 = arith.constant 0 : i32
    %c0_i32_1 = arith.constant 0 : i32
    return %c0_i32, %c0_i32_0 : i32, i32
  }
  func.func @transform_3(%arg0: i32) -> (i32, i32) {
    %c0_i32 = arith.constant 0 : i32
    %c0_i32_0 = arith.constant 0 : i32
    return %c0_i32, %arg0 : i32, i32
  }
}

module attributes {stable_mosaic.version = 11 : i64} {
  func.func @_conv_fused_kernel(%arg0: i32, %arg1: memref<72x256xbf16, #tpu.memory_space<vmem>>, %arg2: memref<8x72xbf16, #tpu.memory_space<vmem>>, %arg3: memref<8x1xf32, #tpu.memory_space<vmem>>, %arg4: memref<8x256xbf16, #tpu.memory_space<vmem>>) attributes {dimension_semantics = [#tpu.dimension_semantics<parallel>], iteration_bounds = array<i64: 2>, scalar_prefetch = 0 : i64, scratch_operands = 0 : i64, tpu.core_type = #tpu.core_type<tc>, window_params = [{transform_indices = @transform_0, window_bounds = array<i64: 72, 256>}, {pipeline_mode = #tpu.pipeline_mode<synchronous>, transform_indices = @transform_1, window_bounds = array<i64: 8, 72>}, {pipeline_mode = #tpu.pipeline_mode<synchronous>, transform_indices = @transform_2, window_bounds = array<i64: 8, 1>}, {transform_indices = @transform_3, window_bounds = array<i64: 8, 256>}]} {
    %c0 = arith.constant 0 : index
    %c0_0 = arith.constant 0 : index
    %0 = vector.load %arg2[%c0, %c0_0] : memref<8x72xbf16, #tpu.memory_space<vmem>>, vector<8x72xbf16>
    %c0_1 = arith.constant 0 : index
    %c0_2 = arith.constant 0 : index
    %1 = vector.load %arg1[%c0_1, %c0_2] : memref<72x256xbf16, #tpu.memory_space<vmem>>, vector<72x256xbf16>
    %cst = arith.constant dense<0.000000e+00> : vector<8x256xf32>
    %2 = tpu.matmul %0, %1, %cst {dimension_numbers = #tpu.dot_dimension_numbers<[1], [0], [0], [1], [0, 0, 1, 1], [], []>} : vector<8x72xbf16>, vector<72x256xbf16>, vector<8x256xf32> -> vector<8x256xf32>
    %c0_3 = arith.constant 0 : index
    %c0_4 = arith.constant 0 : index
    %3 = vector.load %arg3[%c0_3, %c0_4] : memref<8x1xf32, #tpu.memory_space<vmem>>, vector<8x1xf32>
    %4 = vector.broadcast %3 : vector<8x1xf32> to vector<8x256xf32>
    %5 = arith.addf %2, %4 : vector<8x256xf32>
    %cst_5 = arith.constant 0.000000e+00 : f32
    %6 = vector.broadcast %cst_5 : f32 to vector<8x256xf32>
    %7 = arith.maximumf %5, %6 : vector<8x256xf32>
    %8 = arith.truncf %7 : vector<8x256xf32> to vector<8x256xbf16>
    %c0_6 = arith.constant 0 : index
    %c0_7 = arith.constant 0 : index
    %9 = vector.load %arg4[%c0_6, %c0_7] : memref<8x256xbf16, #tpu.memory_space<vmem>>, vector<8x256xbf16>
    tpu.vector_store %arg4[%c0_6, %c0_7], %8 {strides = array<i32>} : memref<8x256xbf16, #tpu.memory_space<vmem>>, vector<8x256xbf16>,
    return
  }
  func.func @transform_0(%arg0: i32) -> (i32, i32) {
    %c0_i32 = arith.constant 0 : i32
    %c0_i32_0 = arith.constant 0 : i32
    return %c0_i32, %arg0 : i32, i32
  }
  func.func @transform_1(%arg0: i32) -> (i32, i32) {
    %c0_i32 = arith.constant 0 : i32
    %c0_i32_0 = arith.constant 0 : i32
    %c0_i32_1 = arith.constant 0 : i32
    return %c0_i32, %c0_i32_0 : i32, i32
  }
  func.func @transform_2(%arg0: i32) -> (i32, i32) {
    %c0_i32 = arith.constant 0 : i32
    %c0_i32_0 = arith.constant 0 : i32
    %c0_i32_1 = arith.constant 0 : i32
    return %c0_i32, %c0_i32_0 : i32, i32
  }
  func.func @transform_3(%arg0: i32) -> (i32, i32) {
    %c0_i32 = arith.constant 0 : i32
    %c0_i32_0 = arith.constant 0 : i32
    return %c0_i32, %arg0 : i32, i32
  }
}

module attributes {stable_mosaic.version = 11 : i64} {
  func.func @_conv_fused_kernel(%arg0: i32, %arg1: memref<80x256xbf16, #tpu.memory_space<vmem>>, %arg2: memref<8x80xbf16, #tpu.memory_space<vmem>>, %arg3: memref<8x1xf32, #tpu.memory_space<vmem>>, %arg4: memref<8x256xbf16, #tpu.memory_space<vmem>>) attributes {dimension_semantics = [#tpu.dimension_semantics<parallel>], iteration_bounds = array<i64: 2>, scalar_prefetch = 0 : i64, scratch_operands = 0 : i64, tpu.core_type = #tpu.core_type<tc>, window_params = [{transform_indices = @transform_0, window_bounds = array<i64: 80, 256>}, {pipeline_mode = #tpu.pipeline_mode<synchronous>, transform_indices = @transform_1, window_bounds = array<i64: 8, 80>}, {pipeline_mode = #tpu.pipeline_mode<synchronous>, transform_indices = @transform_2, window_bounds = array<i64: 8, 1>}, {transform_indices = @transform_3, window_bounds = array<i64: 8, 256>}]} {
    %c0 = arith.constant 0 : index
    %c0_0 = arith.constant 0 : index
    %0 = vector.load %arg2[%c0, %c0_0] : memref<8x80xbf16, #tpu.memory_space<vmem>>, vector<8x80xbf16>
    %c0_1 = arith.constant 0 : index
    %c0_2 = arith.constant 0 : index
    %1 = vector.load %arg1[%c0_1, %c0_2] : memref<80x256xbf16, #tpu.memory_space<vmem>>, vector<80x256xbf16>
    %cst = arith.constant dense<0.000000e+00> : vector<8x256xf32>
    %2 = tpu.matmul %0, %1, %cst {dimension_numbers = #tpu.dot_dimension_numbers<[1], [0], [0], [1], [0, 0, 1, 1], [], []>} : vector<8x80xbf16>, vector<80x256xbf16>, vector<8x256xf32> -> vector<8x256xf32>
    %c0_3 = arith.constant 0 : index
    %c0_4 = arith.constant 0 : index
    %3 = vector.load %arg3[%c0_3, %c0_4] : memref<8x1xf32, #tpu.memory_space<vmem>>, vector<8x1xf32>
    %4 = vector.broadcast %3 : vector<8x1xf32> to vector<8x256xf32>
    %5 = arith.addf %2, %4 : vector<8x256xf32>
    %6 = arith.truncf %5 : vector<8x256xf32> to vector<8x256xbf16>
    %c0_5 = arith.constant 0 : index
    %c0_6 = arith.constant 0 : index
    %7 = vector.load %arg4[%c0_5, %c0_6] : memref<8x256xbf16, #tpu.memory_space<vmem>>, vector<8x256xbf16>
    tpu.vector_store %arg4[%c0_5, %c0_6], %6 {strides = array<i32>} : memref<8x256xbf16, #tpu.memory_space<vmem>>, vector<8x256xbf16>,
    return
  }
  func.func @transform_0(%arg0: i32) -> (i32, i32) {
    %c0_i32 = arith.constant 0 : i32
    %c0_i32_0 = arith.constant 0 : i32
    return %c0_i32, %arg0 : i32, i32
  }
  func.func @transform_1(%arg0: i32) -> (i32, i32) {
    %c0_i32 = arith.constant 0 : i32
    %c0_i32_0 = arith.constant 0 : i32
    %c0_i32_1 = arith.constant 0 : i32
    return %c0_i32, %c0_i32_0 : i32, i32
  }
  func.func @transform_2(%arg0: i32) -> (i32, i32) {
    %c0_i32 = arith.constant 0 : i32
    %c0_i32_0 = arith.constant 0 : i32
    %c0_i32_1 = arith.constant 0 : i32
    return %c0_i32, %c0_i32_0 : i32, i32
  }
  func.func @transform_3(%arg0: i32) -> (i32, i32) {
    %c0_i32 = arith.constant 0 : i32
    %c0_i32_0 = arith.constant 0 : i32
    return %c0_i32, %arg0 : i32, i32
  }
}

module attributes {stable_mosaic.version = 11 : i64} {
  func.func @_conv_fused_kernel(%arg0: i32, %arg1: memref<72x128xbf16, #tpu.memory_space<vmem>>, %arg2: memref<8x72xbf16, #tpu.memory_space<vmem>>, %arg3: memref<8x1xf32, #tpu.memory_space<vmem>>, %arg4: memref<8x128xbf16, #tpu.memory_space<vmem>>) attributes {dimension_semantics = [#tpu.dimension_semantics<parallel>], iteration_bounds = array<i64: 1>, scalar_prefetch = 0 : i64, scratch_operands = 0 : i64, tpu.core_type = #tpu.core_type<tc>, window_params = [{transform_indices = @transform_0, window_bounds = array<i64: 72, 128>}, {pipeline_mode = #tpu.pipeline_mode<synchronous>, transform_indices = @transform_1, window_bounds = array<i64: 8, 72>}, {pipeline_mode = #tpu.pipeline_mode<synchronous>, transform_indices = @transform_2, window_bounds = array<i64: 8, 1>}, {transform_indices = @transform_3, window_bounds = array<i64: 8, 128>}]} {
    %c0 = arith.constant 0 : index
    %c0_0 = arith.constant 0 : index
    %0 = vector.load %arg2[%c0, %c0_0] : memref<8x72xbf16, #tpu.memory_space<vmem>>, vector<8x72xbf16>
    %c0_1 = arith.constant 0 : index
    %c0_2 = arith.constant 0 : index
    %1 = vector.load %arg1[%c0_1, %c0_2] : memref<72x128xbf16, #tpu.memory_space<vmem>>, vector<72x128xbf16>
    %cst = arith.constant dense<0.000000e+00> : vector<8x128xf32>
    %2 = tpu.matmul %0, %1, %cst {dimension_numbers = #tpu.dot_dimension_numbers<[1], [0], [0], [1], [0, 0, 1, 1], [], []>} : vector<8x72xbf16>, vector<72x128xbf16>, vector<8x128xf32> -> vector<8x128xf32>
    %c0_3 = arith.constant 0 : index
    %c0_4 = arith.constant 0 : index
    %3 = vector.load %arg3[%c0_3, %c0_4] : memref<8x1xf32, #tpu.memory_space<vmem>>, vector<8x1xf32>
    %4 = vector.broadcast %3 : vector<8x1xf32> to vector<8x128xf32>
    %5 = arith.addf %2, %4 : vector<8x128xf32>
    %cst_5 = arith.constant 0.000000e+00 : f32
    %6 = vector.broadcast %cst_5 : f32 to vector<8x128xf32>
    %7 = arith.maximumf %5, %6 : vector<8x128xf32>
    %8 = arith.truncf %7 : vector<8x128xf32> to vector<8x128xbf16>
    %c0_6 = arith.constant 0 : index
    %c0_7 = arith.constant 0 : index
    %9 = vector.load %arg4[%c0_6, %c0_7] : memref<8x128xbf16, #tpu.memory_space<vmem>>, vector<8x128xbf16>
    tpu.vector_store %arg4[%c0_6, %c0_7], %8 {strides = array<i32>} : memref<8x128xbf16, #tpu.memory_space<vmem>>, vector<8x128xbf16>,
    return
  }
  func.func @transform_0(%arg0: i32) -> (i32, i32) {
    %c0_i32 = arith.constant 0 : i32
    %c0_i32_0 = arith.constant 0 : i32
    return %c0_i32, %arg0 : i32, i32
  }
  func.func @transform_1(%arg0: i32) -> (i32, i32) {
    %c0_i32 = arith.constant 0 : i32
    %c0_i32_0 = arith.constant 0 : i32
    %c0_i32_1 = arith.constant 0 : i32
    return %c0_i32, %c0_i32_0 : i32, i32
  }
  func.func @transform_2(%arg0: i32) -> (i32, i32) {
    %c0_i32 = arith.constant 0 : i32
    %c0_i32_0 = arith.constant 0 : i32
    %c0_i32_1 = arith.constant 0 : i32
    return %c0_i32, %c0_i32_0 : i32, i32
  }
  func.func @transform_3(%arg0: i32) -> (i32, i32) {
    %c0_i32 = arith.constant 0 : i32
    %c0_i32_0 = arith.constant 0 : i32
    return %c0_i32, %arg0 : i32, i32
  }
}

module attributes {stable_mosaic.version = 11 : i64} {
  func.func @_conv_fused_kernel(%arg0: i32, %arg1: memref<80x128xbf16, #tpu.memory_space<vmem>>, %arg2: memref<8x80xbf16, #tpu.memory_space<vmem>>, %arg3: memref<8x1xf32, #tpu.memory_space<vmem>>, %arg4: memref<8x128xbf16, #tpu.memory_space<vmem>>) attributes {dimension_semantics = [#tpu.dimension_semantics<parallel>], iteration_bounds = array<i64: 1>, scalar_prefetch = 0 : i64, scratch_operands = 0 : i64, tpu.core_type = #tpu.core_type<tc>, window_params = [{transform_indices = @transform_0, window_bounds = array<i64: 80, 128>}, {pipeline_mode = #tpu.pipeline_mode<synchronous>, transform_indices = @transform_1, window_bounds = array<i64: 8, 80>}, {pipeline_mode = #tpu.pipeline_mode<synchronous>, transform_indices = @transform_2, window_bounds = array<i64: 8, 1>}, {transform_indices = @transform_3, window_bounds = array<i64: 8, 128>}]} {
    %c0 = arith.constant 0 : index
    %c0_0 = arith.constant 0 : index
    %0 = vector.load %arg2[%c0, %c0_0] : memref<8x80xbf16, #tpu.memory_space<vmem>>, vector<8x80xbf16>
    %c0_1 = arith.constant 0 : index
    %c0_2 = arith.constant 0 : index
    %1 = vector.load %arg1[%c0_1, %c0_2] : memref<80x128xbf16, #tpu.memory_space<vmem>>, vector<80x128xbf16>
    %cst = arith.constant dense<0.000000e+00> : vector<8x128xf32>
    %2 = tpu.matmul %0, %1, %cst {dimension_numbers = #tpu.dot_dimension_numbers<[1], [0], [0], [1], [0, 0, 1, 1], [], []>} : vector<8x80xbf16>, vector<80x128xbf16>, vector<8x128xf32> -> vector<8x128xf32>
    %c0_3 = arith.constant 0 : index
    %c0_4 = arith.constant 0 : index
    %3 = vector.load %arg3[%c0_3, %c0_4] : memref<8x1xf32, #tpu.memory_space<vmem>>, vector<8x1xf32>
    %4 = vector.broadcast %3 : vector<8x1xf32> to vector<8x128xf32>
    %5 = arith.addf %2, %4 : vector<8x128xf32>
    %6 = arith.truncf %5 : vector<8x128xf32> to vector<8x128xbf16>
    %c0_5 = arith.constant 0 : index
    %c0_6 = arith.constant 0 : index
    %7 = vector.load %arg4[%c0_5, %c0_6] : memref<8x128xbf16, #tpu.memory_space<vmem>>, vector<8x128xbf16>
    tpu.vector_store %arg4[%c0_5, %c0_6], %6 {strides = array<i32>} : memref<8x128xbf16, #tpu.memory_space<vmem>>, vector<8x128xbf16>,
    return
  }
  func.func @transform_0(%arg0: i32) -> (i32, i32) {
    %c0_i32 = arith.constant 0 : i32
    %c0_i32_0 = arith.constant 0 : i32
    return %c0_i32, %arg0 : i32, i32
  }
  func.func @transform_1(%arg0: i32) -> (i32, i32) {
    %c0_i32 = arith.constant 0 : i32
    %c0_i32_0 = arith.constant 0 : i32
    %c0_i32_1 = arith.constant 0 : i32
    return %c0_i32, %c0_i32_0 : i32, i32
  }
  func.func @transform_2(%arg0: i32) -> (i32, i32) {
    %c0_i32 = arith.constant 0 : i32
    %c0_i32_0 = arith.constant 0 : i32
    %c0_i32_1 = arith.constant 0 : i32
    return %c0_i32, %c0_i32_0 : i32, i32
  }
  func.func @transform_3(%arg0: i32) -> (i32, i32) {
    %c0_i32 = arith.constant 0 : i32
    %c0_i32_0 = arith.constant 0 : i32
    return %c0_i32, %arg0 : i32, i32
  }
}

module attributes {stable_mosaic.version = 11 : i64} {
  func.func @_conv_fused_kernel(%arg0: i32, %arg1: memref<72x32xbf16, #tpu.memory_space<vmem>>, %arg2: memref<16x72xbf16, #tpu.memory_space<vmem>>, %arg3: memref<16x1xf32, #tpu.memory_space<vmem>>, %arg4: memref<16x32xbf16, #tpu.memory_space<vmem>>) attributes {dimension_semantics = [#tpu.dimension_semantics<parallel>], iteration_bounds = array<i64: 1>, scalar_prefetch = 0 : i64, scratch_operands = 0 : i64, tpu.core_type = #tpu.core_type<tc>, window_params = [{transform_indices = @transform_0, window_bounds = array<i64: 72, 32>}, {pipeline_mode = #tpu.pipeline_mode<synchronous>, transform_indices = @transform_1, window_bounds = array<i64: 16, 72>}, {pipeline_mode = #tpu.pipeline_mode<synchronous>, transform_indices = @transform_2, window_bounds = array<i64: 16, 1>}, {transform_indices = @transform_3, window_bounds = array<i64: 16, 32>}]} {
    %c0 = arith.constant 0 : index
    %c0_0 = arith.constant 0 : index
    %0 = vector.load %arg2[%c0, %c0_0] : memref<16x72xbf16, #tpu.memory_space<vmem>>, vector<16x72xbf16>
    %c0_1 = arith.constant 0 : index
    %c0_2 = arith.constant 0 : index
    %1 = vector.load %arg1[%c0_1, %c0_2] : memref<72x32xbf16, #tpu.memory_space<vmem>>, vector<72x32xbf16>
    %cst = arith.constant dense<0.000000e+00> : vector<16x32xf32>
    %2 = tpu.matmul %0, %1, %cst {dimension_numbers = #tpu.dot_dimension_numbers<[1], [0], [0], [1], [0, 0, 1, 1], [], []>} : vector<16x72xbf16>, vector<72x32xbf16>, vector<16x32xf32> -> vector<16x32xf32>
    %c0_3 = arith.constant 0 : index
    %c0_4 = arith.constant 0 : index
    %3 = vector.load %arg3[%c0_3, %c0_4] : memref<16x1xf32, #tpu.memory_space<vmem>>, vector<16x1xf32>
    %4 = vector.broadcast %3 : vector<16x1xf32> to vector<16x32xf32>
    %5 = arith.addf %2, %4 : vector<16x32xf32>
    %cst_5 = arith.constant 0.000000e+00 : f32
    %6 = vector.broadcast %cst_5 : f32 to vector<16x32xf32>
    %7 = arith.maximumf %5, %6 : vector<16x32xf32>
    %8 = arith.truncf %7 : vector<16x32xf32> to vector<16x32xbf16>
    %c0_6 = arith.constant 0 : index
    %c0_7 = arith.constant 0 : index
    %9 = vector.load %arg4[%c0_6, %c0_7] : memref<16x32xbf16, #tpu.memory_space<vmem>>, vector<16x32xbf16>
    tpu.vector_store %arg4[%c0_6, %c0_7], %8 {strides = array<i32>} : memref<16x32xbf16, #tpu.memory_space<vmem>>, vector<16x32xbf16>,
    return
  }
  func.func @transform_0(%arg0: i32) -> (i32, i32) {
    %c0_i32 = arith.constant 0 : i32
    %c0_i32_0 = arith.constant 0 : i32
    return %c0_i32, %arg0 : i32, i32
  }
  func.func @transform_1(%arg0: i32) -> (i32, i32) {
    %c0_i32 = arith.constant 0 : i32
    %c0_i32_0 = arith.constant 0 : i32
    %c0_i32_1 = arith.constant 0 : i32
    return %c0_i32, %c0_i32_0 : i32, i32
  }
  func.func @transform_2(%arg0: i32) -> (i32, i32) {
    %c0_i32 = arith.constant 0 : i32
    %c0_i32_0 = arith.constant 0 : i32
    %c0_i32_1 = arith.constant 0 : i32
    return %c0_i32, %c0_i32_0 : i32, i32
  }
  func.func @transform_3(%arg0: i32) -> (i32, i32) {
    %c0_i32 = arith.constant 0 : i32
    %c0_i32_0 = arith.constant 0 : i32
    return %c0_i32, %arg0 : i32, i32
  }
}

module attributes {stable_mosaic.version = 11 : i64} {
  func.func @_tail_kernel(%arg0: memref<16x32xbf16, #tpu.memory_space<vmem>>, %arg1: memref<16x1xf32, #tpu.memory_space<vmem>>, %arg2: memref<16x1xf32, #tpu.memory_space<vmem>>, %arg3: memref<32x2xbf16, #tpu.memory_space<vmem>>, %arg4: memref<5x16xbf16, #tpu.memory_space<vmem>>, %arg5: memref<5x1xf32, #tpu.memory_space<vmem>>, %arg6: memref<16x2xf32, #tpu.memory_space<vmem>>, %arg7: memref<5x2xf32, #tpu.memory_space<vmem>>) attributes {dimension_semantics = [], scalar_prefetch = 0 : i64, scratch_operands = 0 : i64, tpu.core_type = #tpu.core_type<tc>} {
    %c0 = arith.constant 0 : index
    %c0_0 = arith.constant 0 : index
    %0 = vector.load %arg0[%c0, %c0_0] : memref<16x32xbf16, #tpu.memory_space<vmem>>, vector<16x32xbf16>
    %1 = arith.extf %0 : vector<16x32xbf16> to vector<16x32xf32>
    %c0_1 = arith.constant 0 : index
    %c0_2 = arith.constant 0 : index
    %2 = vector.load %arg1[%c0_1, %c0_2] : memref<16x1xf32, #tpu.memory_space<vmem>>, vector<16x1xf32>
    %3 = vector.broadcast %2 : vector<16x1xf32> to vector<16x32xf32>
    %4 = arith.mulf %1, %3 : vector<16x32xf32>
    %c0_3 = arith.constant 0 : index
    %c0_4 = arith.constant 0 : index
    %5 = vector.load %arg2[%c0_3, %c0_4] : memref<16x1xf32, #tpu.memory_space<vmem>>, vector<16x1xf32>
    %6 = vector.broadcast %5 : vector<16x1xf32> to vector<16x32xf32>
    %7 = arith.addf %4, %6 : vector<16x32xf32>
    %cst = arith.constant 0.000000e+00 : f32
    %8 = vector.broadcast %cst : f32 to vector<16x32xf32>
    %9 = arith.maximumf %7, %8 : vector<16x32xf32>
    %10 = arith.truncf %9 : vector<16x32xf32> to vector<16x32xbf16>
    %c0_5 = arith.constant 0 : index
    %c0_6 = arith.constant 0 : index
    %11 = vector.load %arg3[%c0_5, %c0_6] : memref<32x2xbf16, #tpu.memory_space<vmem>>, vector<32x2xbf16>
    %cst_7 = arith.constant dense<0.000000e+00> : vector<16x2xf32>
    %12 = tpu.matmul %10, %11, %cst_7 {dimension_numbers = #tpu.dot_dimension_numbers<[1], [0], [0], [1], [0, 0, 1, 1], [], []>} : vector<16x32xbf16>, vector<32x2xbf16>, vector<16x2xf32> -> vector<16x2xf32>
    %c0_8 = arith.constant 0 : index
    %c0_9 = arith.constant 0 : index
    %13 = vector.load %arg6[%c0_8, %c0_9] : memref<16x2xf32, #tpu.memory_space<vmem>>, vector<16x2xf32>
    tpu.vector_store %arg6[%c0_8, %c0_9], %12 {strides = array<i32>} : memref<16x2xf32, #tpu.memory_space<vmem>>, vector<16x2xf32>,
    %c0_10 = arith.constant 0 : index
    %c0_11 = arith.constant 0 : index
    %14 = vector.load %arg4[%c0_10, %c0_11] : memref<5x16xbf16, #tpu.memory_space<vmem>>, vector<5x16xbf16>
    %15 = arith.truncf %12 : vector<16x2xf32> to vector<16x2xbf16>
    %cst_12 = arith.constant dense<0.000000e+00> : vector<5x2xf32>
    %16 = tpu.matmul %14, %15, %cst_12 {dimension_numbers = #tpu.dot_dimension_numbers<[1], [0], [0], [1], [0, 0, 1, 1], [], []>} : vector<5x16xbf16>, vector<16x2xbf16>, vector<5x2xf32> -> vector<5x2xf32>
    %c0_13 = arith.constant 0 : index
    %c0_14 = arith.constant 0 : index
    %17 = vector.load %arg5[%c0_13, %c0_14] : memref<5x1xf32, #tpu.memory_space<vmem>>, vector<5x1xf32>
    %18 = vector.broadcast %17 : vector<5x1xf32> to vector<5x2xf32>
    %19 = arith.addf %16, %18 : vector<5x2xf32>
    %c0_15 = arith.constant 0 : index
    %c0_16 = arith.constant 0 : index
    %20 = vector.load %arg7[%c0_15, %c0_16] : memref<5x2xf32, #tpu.memory_space<vmem>>, vector<5x2xf32>
    tpu.vector_store %arg7[%c0_15, %c0_16], %19 {strides = array<i32>} : memref<5x2xf32, #tpu.memory_space<vmem>>, vector<5x2xf32>,
    return
  }
}

module attributes {stable_mosaic.version = 11 : i64} {
  func.func @_conv_fused_kernel(%arg0: i32, %arg1: memref<152x32xbf16, #tpu.memory_space<vmem>>, %arg2: memref<16x152xbf16, #tpu.memory_space<vmem>>, %arg3: memref<16x1xf32, #tpu.memory_space<vmem>>, %arg4: memref<16x32xbf16, #tpu.memory_space<vmem>>) attributes {dimension_semantics = [#tpu.dimension_semantics<parallel>], iteration_bounds = array<i64: 1>, scalar_prefetch = 0 : i64, scratch_operands = 0 : i64, tpu.core_type = #tpu.core_type<tc>, window_params = [{transform_indices = @transform_0, window_bounds = array<i64: 152, 32>}, {pipeline_mode = #tpu.pipeline_mode<synchronous>, transform_indices = @transform_1, window_bounds = array<i64: 16, 152>}, {pipeline_mode = #tpu.pipeline_mode<synchronous>, transform_indices = @transform_2, window_bounds = array<i64: 16, 1>}, {transform_indices = @transform_3, window_bounds = array<i64: 16, 32>}]} {
    %c0 = arith.constant 0 : index
    %c0_0 = arith.constant 0 : index
    %0 = vector.load %arg2[%c0, %c0_0] : memref<16x152xbf16, #tpu.memory_space<vmem>>, vector<16x152xbf16>
    %c0_1 = arith.constant 0 : index
    %c0_2 = arith.constant 0 : index
    %1 = vector.load %arg1[%c0_1, %c0_2] : memref<152x32xbf16, #tpu.memory_space<vmem>>, vector<152x32xbf16>
    %cst = arith.constant dense<0.000000e+00> : vector<16x32xf32>
    %2 = tpu.matmul %0, %1, %cst {dimension_numbers = #tpu.dot_dimension_numbers<[1], [0], [0], [1], [0, 0, 1, 1], [], []>} : vector<16x152xbf16>, vector<152x32xbf16>, vector<16x32xf32> -> vector<16x32xf32>
    %c0_3 = arith.constant 0 : index
    %c0_4 = arith.constant 0 : index
    %3 = vector.load %arg3[%c0_3, %c0_4] : memref<16x1xf32, #tpu.memory_space<vmem>>, vector<16x1xf32>
    %4 = vector.broadcast %3 : vector<16x1xf32> to vector<16x32xf32>
    %5 = arith.addf %2, %4 : vector<16x32xf32>
    %6 = arith.truncf %5 : vector<16x32xf32> to vector<16x32xbf16>
    %c0_5 = arith.constant 0 : index
    %c0_6 = arith.constant 0 : index
    %7 = vector.load %arg4[%c0_5, %c0_6] : memref<16x32xbf16, #tpu.memory_space<vmem>>, vector<16x32xbf16>
    tpu.vector_store %arg4[%c0_5, %c0_6], %6 {strides = array<i32>} : memref<16x32xbf16, #tpu.memory_space<vmem>>, vector<16x32xbf16>,
    return
  }
  func.func @transform_0(%arg0: i32) -> (i32, i32) {
    %c0_i32 = arith.constant 0 : i32
    %c0_i32_0 = arith.constant 0 : i32
    return %c0_i32, %arg0 : i32, i32
  }
  func.func @transform_1(%arg0: i32) -> (i32, i32) {
    %c0_i32 = arith.constant 0 : i32
    %c0_i32_0 = arith.constant 0 : i32
    %c0_i32_1 = arith.constant 0 : i32
    return %c0_i32, %c0_i32_0 : i32, i32
  }
  func.func @transform_2(%arg0: i32) -> (i32, i32) {
    %c0_i32 = arith.constant 0 : i32
    %c0_i32_0 = arith.constant 0 : i32
    %c0_i32_1 = arith.constant 0 : i32
    return %c0_i32, %c0_i32_0 : i32, i32
  }
  func.func @transform_3(%arg0: i32) -> (i32, i32) {
    %c0_i32 = arith.constant 0 : i32
    %c0_i32_0 = arith.constant 0 : i32
    return %c0_i32, %arg0 : i32, i32
  }
}

</mosaic_0001>

<bundles_post_ra>
// kernel: presnet_forward.9
= control target key start
LH: loop header
LB: loop body
LE: loop exit
PB: predicated region body
PF: predicated region fallthrough
CT: control target
= control target key end

     0   :  { %s541_s12 = smov 0   ;;  %s543_s13 = smov 0   ;;  %s599_s0 = inlined_call_operand.vmem [shape: bf16[72,512], index: 0, kind: input, shape index: {}]   ;;  %s600_s1 = inlined_call_operand.vmem [shape: bf16[8,72], index: 1, kind: input, shape index: {}]   ;;  %s601_s2 = inlined_call_operand.vmem [shape: f32[8,1], index: 2, kind: input, shape index: {}]   ;;  %s602_s3 = inlined_call_operand.vmem [shape: bf16[8,512], index: 3, kind: output, shape index: {}]  }
   0x1   :  { %s545_s14 = smov 0  }
   0x2 LB: > { %s428_s15 = sadd.s32 4294967295, %s518_s14   ;;  %s558_s16 = sadd.s32 1, %s518_s14   ;;  %s518_s14 = sphi %s545_s14, %s605_s14   ;;  %s514_s13 = sphi %s543_s13, %s604_s13   ;;  %s510_s12 = sphi %s541_s12, %s603_s12  }
   0x3   : > { %s17_s17 = ssub.s32 %s518_s14, %s558_s16  ;;  %s20_s18 = sadd.s32 1, %s514_s13 }
   0x4   : > { %p18_p0 = scmp.eq.s32.totalorder %s17_s17, 0  ;;  %p27_p1 = scmp.ne.s32.totalorder %s514_s13, %s510_s12 }
   0x5   : > { %p28_p2 = scmp.eq.s32.totalorder %s518_s14, 0  ;;  %p431_p4 = scmp.ge.s32.totalorder %s518_s14, 2 }
   0x6   : > { %s567_s19 = scalar_select %p18_p0, %s514_s13, %s20_s18  }
   0x7   : > { %p29_p3 = por %p28_p2, %p27_p1  ;;  %127 = sbr.rel (%p431_p4) target bundleno = 21 (0x15), region = 24 }
   0xc   : > { %130 = sbr.rel (!%p29_p3) target bundleno = 21 (0x15), region = 28  ;;  %s132_s20 = sand.u32 (%p29_p3), 1, %s514_s13  }
   0xd   : > { %s452_s21 = sshll.u32 (%p29_p3), %s518_s14, 3  ;;  %s454_s22 = smul.u32 (%p29_p3), 72, %s132_s20 }
   0xe   : > { %s137_s25 = scalar_lea.vmem (%p29_p3), %s599_s0, %s452_s21 }
   0xf   : > { %v182_v0 = vld [vmem:[%s137_s25] sm:$0xff] (%p29_p3)  ;;  %v184_v1 = vld [vmem:[%s137_s25 + $0x10] sm:$0xff] (%p29_p3)  ;;  %s134_s26 = scalar_lea.vmem (%p29_p3), [#allocation2], %s454_s22 }
  0x10   : > { %v186_v2 = vld [vmem:[%s137_s25 + $0x20] sm:$0xff] (%p29_p3)  ;;  %v188_v3 = vld [vmem:[%s137_s25 + $0x30] sm:$0xff] (%p29_p3)  ;;  %183 = vst [vmem:[%s134_s26] sm:$0xff] (%p29_p3), %v182_v0  ;;  %185 = vst [vmem:[%s134_s26 + $0x8] sm:$0xff] (%p29_p3), %v184_v1 }
  0x11   : > { %v190_v4 = vld [vmem:[%s137_s25 + $0x40] sm:$0xff]  ;;  %v192_v5 = vld [vmem:[%s137_s25 + $0x50] sm:$0xff]  ;;  %187 = vst [vmem:[%s134_s26 + $0x10] sm:$0xff] %v186_v2  ;;  %189 = vst [vmem:[%s134_s26 + $0x18] sm:$0xff] %v188_v3 }
  0x12   : > { %191 = vst [vmem:[%s134_s26 + $0x20] sm:$0xff] %v190_v4  ;;  %193 = vst [vmem:[%s134_s26 + $0x28] sm:$0xff] %v192_v5  ;;  %v194_v6 = vld [vmem:[%s137_s25 + $0x60] sm:$0xff]  ;;  %v196_v7 = vld [vmem:[%s137_s25 + $0x70] sm:$0xff] }
  0x13   : > { %v198_v8 = vld [vmem:[%s137_s25 + $0x80] sm:$0xff]  ;;  %195 = vst [vmem:[%s134_s26 + $0x30] sm:$0xff] %v194_v6  ;;  %197 = vst [vmem:[%s134_s26 + $0x38] sm:$0xff] %v196_v7 }
  0x14   : > { %199 = vst [vmem:[%s134_s26 + $0x40] sm:$0xff] %v198_v8 }
  0x15 PF: > { %p434_p5 = scmp.ge.s32.totalorder %s518_s14, 1  ;;  %p204_p6 = scmp.lt.s32.totalorder %s518_s14, 3 }
  0x17   : > { %p205_p7 = pnand %p434_p5, %p204_p6 }
  0x18   : > { %s211_s27 = sand.u32 (!%p205_p7), 1, %s510_s12   ;;  %s435_s7 = sshll.u32 (!%p205_p7), %s428_s15, 1 }
  0x19   : > { %208 = sbr.rel (%p205_p7) target bundleno = 256 (0x100), region = 66  ;;  %p236_p8 = scmp.lt.s32.totalorder (!%p205_p7), %s435_s7, 3 }
  0x1a   : > { %s455_s28 = smul.u32 (!%p205_p7), 72, %s211_s27 }
  0x1c   : > { %s213_s4 = scalar_lea.vmem (!%p205_p7), [#allocation2], %s455_s28 }
  0x1e   : > { %v520_v9 = vmov 0   ;;  %v252_v10 = vld [vmem:[%s601_s2] sm:$0xff]  ;;  %vm307_vm0 = vcmask 1043456   ;;  %vm303_vm1 = vcmask 588800   ;;  %s607_s7 = smov (!%p236_p8, %s435_s7), 3 }
  0x1f   : > { %346 = vmatprep.mubr.bf16.mxu0 %v520_v9  ;;  %481 = vset.pattern.permute.xlu0 %v520_v9  ;;  %v251_v11 = vld [vmem:[%s213_s4 + $0x40] sm:$0xff]  ;;  %v484_v14 = vld [vmem:[%s213_s4 + $0x34] ss:$8 sps:$4 sm:$0xff]   ;;  %v486_v16 = vld [vmem:[%s213_s4 + $0x30] ss:$8 sps:$4 sm:$0xff]   ;;  %s436_s8 = sshll.u32 %s607_s7, 2 }
  0x20   : > { %255 = vperm.xlu0 %481, %v252_v10   ;;  %v446_v12 = vcombine.high %v251_v11, %v251_v11  ;;  %v445_v13 = vcombine.low %v251_v11, %v251_v11  ;;  %v487_v17 = vld [vmem:[%s213_s4 + $0x24] ss:$8 sps:$4 sm:$0xff]   ;;  %v489_v18 = vld [vmem:[%s213_s4 + $0x20] ss:$8 sps:$4 sm:$0xff]   ;;  %v490_v19 = vld [vmem:[%s213_s4 + $0x14] ss:$8 sps:$4 sm:$0xff]   ;;  %s239_s11 = scalar_lea.vmem %s602_s3, %s436_s8 }
  0x21   : > { %v492_v20 = vld [vmem:[%s213_s4 + $0x10] ss:$8 sps:$4 sm:$0xff]   ;;  %v493_v21 = vld [vmem:[%s213_s4 + $0x4] ss:$8 sps:$4 sm:$0xff]   ;;  %v495_v22 = vld [vmem:[%s213_s4] ss:$8 sps:$4 sm:$0xff]  }
  0x22   : > { %447 = vmatprep.subr.msk.bf16.mxu0 %vm307_vm0, %v446_v12  ;;  %v309_v15 = vsel %vm307_vm0, %v445_v13, 0  ;;  %v242_v23 = vld [vmem:[%s600_s1] sm:$0xf] }
  0x23   : > { %321 = vmatpush1.bf16.msra.mxu0 %v309_v15 }
  0x24   : > { %322 = vmatprep.subr.bf16.mxu0 %v484_v14 }
  0x27   : > { %323 = vmatpush1.bf16.msra.mxu0 %v486_v16 }
  0x28   : > { %324 = vmatprep.subr.bf16.mxu0 %v487_v17 }
  0x2b   : > { %325 = vmatpush1.bf16.msra.mxu0 %v489_v18 }
  0x2c   : > { %326 = vmatprep.subr.bf16.mxu0 %v490_v19 }
  0x2f   : > { %327 = vmatpush1.bf16.msra.mxu0 %v492_v20 }
  0x30   : > { %328 = vmatprep.subr.bf16.mxu0 %v493_v21 }
  0x33   : > { %329 = vmatpush1.bf16.msra.mxu0 %v495_v22 }
  0x36   : > { %448 = vmatmul.mubr.msk.bf16.vlgmr.msra.gmra.mxu0 %vm303_vm1, %v242_v23 }
  0x9b   : > { %v256_v24 = vpop.permute.xlu0 %255 }
  0xf6   : > { %v348_v25 = vpop.f32.mrf.mxu0 }
  0xf7   : > { %v349_v26 = vadd.f32 %v348_v25, %v256_v24 }
  0xf8   : > { %v350_v27 = vpop.f32.mrf.mxu0 }
  0xf9   : > { %v351_v28 = vadd.f32 %v350_v27, %v256_v24  ;;  %v355_v30 = vmax.f32 %v349_v26, 0.0 }
  0xfa   : > { %v352_v29 = vpop.f32.mrf.mxu0 }
  0xfb   : > { %v356_v31 = vmax.f32 %v351_v28, 0.0 }
  0xfc   : > { %v353_v32 = vpop.f32.mrf.mxu0 }
  0xfd   : > { %v453_v33 = vpack.c.bf16 %v356_v31, %v355_v30 }
  0xff   : > { %365 = vst [vmem:[%s239_s11] sm:$0xff] %v453_v33 }
 0x100 PF: > { %p10_p9 = scmp.ge.s32.totalorder %s558_s16, 4   ;;  %s603_s12 = smov %s514_s13 }
 0x101   : > { %s604_s13 = smov %s567_s19  ;;  %s605_s14 = smov %s558_s16 }
 0x102   :  { %12 = sbr.rel (!%p10_p9) target bundleno = 2 (0x2), region = 105 }

// kernel: presnet_forward.8
= control target key start
LH: loop header
LB: loop body
LE: loop exit
PB: predicated region body
PF: predicated region fallthrough
CT: control target
= control target key end

     0   :  { %s539_s12 = smov 0   ;;  %s541_s13 = smov 0   ;;  %s597_s0 = inlined_call_operand.vmem [shape: bf16[72,512], index: 0, kind: input, shape index: {}]   ;;  %s598_s1 = inlined_call_operand.vmem [shape: bf16[8,72], index: 1, kind: input, shape index: {}]   ;;  %s599_s2 = inlined_call_operand.vmem [shape: f32[8,1], index: 2, kind: input, shape index: {}]   ;;  %s600_s3 = inlined_call_operand.vmem [shape: bf16[8,512], index: 3, kind: output, shape index: {}]  }
   0x1   :  { %s543_s14 = smov 0  }
   0x2 LB: > { %s426_s15 = sadd.s32 4294967295, %s516_s14   ;;  %s556_s16 = sadd.s32 1, %s516_s14   ;;  %s516_s14 = sphi %s543_s14, %s603_s14   ;;  %s512_s13 = sphi %s541_s13, %s602_s13   ;;  %s508_s12 = sphi %s539_s12, %s601_s12  }
   0x3   : > { %s17_s17 = ssub.s32 %s516_s14, %s556_s16  ;;  %s20_s18 = sadd.s32 1, %s512_s13 }
   0x4   : > { %p18_p0 = scmp.eq.s32.totalorder %s17_s17, 0  ;;  %p27_p1 = scmp.ne.s32.totalorder %s512_s13, %s508_s12 }
   0x5   : > { %p28_p2 = scmp.eq.s32.totalorder %s516_s14, 0  ;;  %p429_p4 = scmp.ge.s32.totalorder %s516_s14, 2 }
   0x6   : > { %s565_s19 = scalar_select %p18_p0, %s512_s13, %s20_s18  }
   0x7   : > { %p29_p3 = por %p28_p2, %p27_p1  ;;  %127 = sbr.rel (%p429_p4) target bundleno = 21 (0x15), region = 24 }
   0xc   : > { %130 = sbr.rel (!%p29_p3) target bundleno = 21 (0x15), region = 28  ;;  %s132_s20 = sand.u32 (%p29_p3), 1, %s512_s13  }
   0xd   : > { %s450_s21 = sshll.u32 (%p29_p3), %s516_s14, 3  ;;  %s452_s22 = smul.u32 (%p29_p3), 72, %s132_s20 }
   0xe   : > { %s137_s25 = scalar_lea.vmem (%p29_p3), %s597_s0, %s450_s21 }
   0xf   : > { %v182_v0 = vld [vmem:[%s137_s25] sm:$0xff] (%p29_p3)  ;;  %v184_v1 = vld [vmem:[%s137_s25 + $0x10] sm:$0xff] (%p29_p3)  ;;  %s134_s26 = scalar_lea.vmem (%p29_p3), [#allocation2], %s452_s22 }
  0x10   : > { %v186_v2 = vld [vmem:[%s137_s25 + $0x20] sm:$0xff] (%p29_p3)  ;;  %v188_v3 = vld [vmem:[%s137_s25 + $0x30] sm:$0xff] (%p29_p3)  ;;  %183 = vst [vmem:[%s134_s26] sm:$0xff] (%p29_p3), %v182_v0  ;;  %185 = vst [vmem:[%s134_s26 + $0x8] sm:$0xff] (%p29_p3), %v184_v1 }
  0x11   : > { %v190_v4 = vld [vmem:[%s137_s25 + $0x40] sm:$0xff]  ;;  %v192_v5 = vld [vmem:[%s137_s25 + $0x50] sm:$0xff]  ;;  %187 = vst [vmem:[%s134_s26 + $0x10] sm:$0xff] %v186_v2  ;;  %189 = vst [vmem:[%s134_s26 + $0x18] sm:$0xff] %v188_v3 }
  0x12   : > { %191 = vst [vmem:[%s134_s26 + $0x20] sm:$0xff] %v190_v4  ;;  %193 = vst [vmem:[%s134_s26 + $0x28] sm:$0xff] %v192_v5  ;;  %v194_v6 = vld [vmem:[%s137_s25 + $0x60] sm:$0xff]  ;;  %v196_v7 = vld [vmem:[%s137_s25 + $0x70] sm:$0xff] }
  0x13   : > { %v198_v8 = vld [vmem:[%s137_s25 + $0x80] sm:$0xff]  ;;  %195 = vst [vmem:[%s134_s26 + $0x30] sm:$0xff] %v194_v6  ;;  %197 = vst [vmem:[%s134_s26 + $0x38] sm:$0xff] %v196_v7 }
  0x14   : > { %199 = vst [vmem:[%s134_s26 + $0x40] sm:$0xff] %v198_v8 }
  0x15 PF: > { %p432_p5 = scmp.ge.s32.totalorder %s516_s14, 1  ;;  %p204_p6 = scmp.lt.s32.totalorder %s516_s14, 3 }
  0x17   : > { %p205_p7 = pnand %p432_p5, %p204_p6 }
  0x18   : > { %s211_s27 = sand.u32 (!%p205_p7), 1, %s508_s12   ;;  %s433_s7 = sshll.u32 (!%p205_p7), %s426_s15, 1 }
  0x19   : > { %208 = sbr.rel (%p205_p7) target bundleno = 254 (0xfe), region = 66  ;;  %p236_p8 = scmp.lt.s32.totalorder (!%p205_p7), %s433_s7, 3 }
  0x1a   : > { %s453_s28 = smul.u32 (!%p205_p7), 72, %s211_s27 }
  0x1c   : > { %s213_s4 = scalar_lea.vmem (!%p205_p7), [#allocation2], %s453_s28 }
  0x1e   : > { %v518_v9 = vmov 0   ;;  %v252_v10 = vld [vmem:[%s599_s2] sm:$0xff]  ;;  %vm307_vm0 = vcmask 1043456   ;;  %vm303_vm1 = vcmask 588800   ;;  %s605_s7 = smov (!%p236_p8, %s433_s7), 3 }
  0x1f   : > { %346 = vmatprep.mubr.bf16.mxu0 %v518_v9  ;;  %479 = vset.pattern.permute.xlu0 %v518_v9  ;;  %v251_v11 = vld [vmem:[%s213_s4 + $0x40] sm:$0xff]  ;;  %v482_v14 = vld [vmem:[%s213_s4 + $0x34] ss:$8 sps:$4 sm:$0xff]   ;;  %v484_v16 = vld [vmem:[%s213_s4 + $0x30] ss:$8 sps:$4 sm:$0xff]   ;;  %s434_s8 = sshll.u32 %s605_s7, 2 }
  0x20   : > { %255 = vperm.xlu0 %479, %v252_v10   ;;  %v444_v12 = vcombine.high %v251_v11, %v251_v11  ;;  %v443_v13 = vcombine.low %v251_v11, %v251_v11  ;;  %v485_v17 = vld [vmem:[%s213_s4 + $0x24] ss:$8 sps:$4 sm:$0xff]   ;;  %v487_v18 = vld [vmem:[%s213_s4 + $0x20] ss:$8 sps:$4 sm:$0xff]   ;;  %v488_v19 = vld [vmem:[%s213_s4 + $0x14] ss:$8 sps:$4 sm:$0xff]   ;;  %s239_s11 = scalar_lea.vmem %s600_s3, %s434_s8 }
  0x21   : > { %v490_v20 = vld [vmem:[%s213_s4 + $0x10] ss:$8 sps:$4 sm:$0xff]   ;;  %v491_v21 = vld [vmem:[%s213_s4 + $0x4] ss:$8 sps:$4 sm:$0xff]   ;;  %v493_v22 = vld [vmem:[%s213_s4] ss:$8 sps:$4 sm:$0xff]  }
  0x22   : > { %445 = vmatprep.subr.msk.bf16.mxu0 %vm307_vm0, %v444_v12  ;;  %v309_v15 = vsel %vm307_vm0, %v443_v13, 0  ;;  %v242_v23 = vld [vmem:[%s598_s1] sm:$0xf] }
  0x23   : > { %321 = vmatpush1.bf16.msra.mxu0 %v309_v15 }
  0x24   : > { %322 = vmatprep.subr.bf16.mxu0 %v482_v14 }
  0x27   : > { %323 = vmatpush1.bf16.msra.mxu0 %v484_v16 }
  0x28   : > { %324 = vmatprep.subr.bf16.mxu0 %v485_v17 }
  0x2b   : > { %325 = vmatpush1.bf16.msra.mxu0 %v487_v18 }
  0x2c   : > { %326 = vmatprep.subr.bf16.mxu0 %v488_v19 }
  0x2f   : > { %327 = vmatpush1.bf16.msra.mxu0 %v490_v20 }
  0x30   : > { %328 = vmatprep.subr.bf16.mxu0 %v491_v21 }
  0x33   : > { %329 = vmatpush1.bf16.msra.mxu0 %v493_v22 }
  0x36   : > { %446 = vmatmul.mubr.msk.bf16.vlgmr.msra.gmra.mxu0 %vm303_vm1, %v242_v23 }
  0x9b   : > { %v256_v24 = vpop.permute.xlu0 %255 }
  0xf6   : > { %v348_v25 = vpop.f32.mrf.mxu0 }
  0xf7   : > { %v349_v27 = vadd.f32 %v348_v25, %v256_v24 }
  0xf8   : > { %v350_v26 = vpop.f32.mrf.mxu0 }
  0xf9   : > { %v351_v28 = vadd.f32 %v350_v26, %v256_v24 }
  0xfa   : > { %v352_v29 = vpop.f32.mrf.mxu0 }
  0xfb   : > { %v451_v30 = vpack.c.bf16 %v351_v28, %v349_v27 }
  0xfc   : > { %v353_v31 = vpop.f32.mrf.mxu0 }
  0xfd   : > { %363 = vst [vmem:[%s239_s11] sm:$0xff] %v451_v30 }
  0xfe PF: > { %p10_p9 = scmp.ge.s32.totalorder %s556_s16, 4   ;;  %s601_s12 = smov %s512_s13 }
  0xff   : > { %s602_s13 = smov %s565_s19  ;;  %s603_s14 = smov %s556_s16 }
 0x100   :  { %12 = sbr.rel (!%p10_p9) target bundleno = 2 (0x2), region = 105 }

// kernel: presnet_forward.10
= control target key start
LH: loop header
LB: loop body
LE: loop exit
PB: predicated region body
PF: predicated region fallthrough
CT: control target
= control target key end

     0   :  { %s542_s12 = smov 0   ;;  %s544_s13 = smov 0   ;;  %s600_s0 = inlined_call_operand.vmem [shape: bf16[80,512], index: 0, kind: input, shape index: {}]   ;;  %s601_s1 = inlined_call_operand.vmem [shape: bf16[8,80], index: 1, kind: input, shape index: {}]   ;;  %s602_s2 = inlined_call_operand.vmem [shape: f32[8,1], index: 2, kind: input, shape index: {}]   ;;  %s603_s3 = inlined_call_operand.vmem [shape: bf16[8,512], index: 3, kind: output, shape index: {}]  }
   0x1   :  { %s546_s14 = smov 0  }
   0x2 LB: > { %s429_s15 = sadd.s32 4294967295, %s519_s14   ;;  %s559_s16 = sadd.s32 1, %s519_s14   ;;  %s519_s14 = sphi %s546_s14, %s606_s14   ;;  %s515_s13 = sphi %s544_s13, %s605_s13   ;;  %s511_s12 = sphi %s542_s12, %s604_s12  }
   0x3   : > { %s17_s17 = ssub.s32 %s519_s14, %s559_s16  ;;  %s20_s18 = sadd.s32 1, %s515_s13 }
   0x4   : > { %p18_p0 = scmp.eq.s32.totalorder %s17_s17, 0  ;;  %p27_p1 = scmp.ne.s32.totalorder %s515_s13, %s511_s12 }
   0x5   : > { %p28_p2 = scmp.eq.s32.totalorder %s519_s14, 0  ;;  %p432_p4 = scmp.ge.s32.totalorder %s519_s14, 2 }
   0x6   : > { %s568_s19 = scalar_select %p18_p0, %s515_s13, %s20_s18  }
   0x7   : > { %p29_p3 = por %p28_p2, %p27_p1  ;;  %127 = sbr.rel (%p432_p4) target bundleno = 21 (0x15), region = 24 }
   0xc   : > { %130 = sbr.rel (!%p29_p3) target bundleno = 21 (0x15), region = 28  ;;  %s132_s20 = sand.u32 (%p29_p3), 1, %s515_s13  }
   0xd   : > { %s452_s21 = sshll.u32 (%p29_p3), %s519_s14, 3  ;;  %s454_s22 = smul.u32 (%p29_p3), 80, %s132_s20 }
   0xe   : > { %s137_s25 = scalar_lea.vmem (%p29_p3), %s600_s0, %s452_s21 }
   0xf   : > { %v184_v0 = vld [vmem:[%s137_s25] sm:$0xff] (%p29_p3)  ;;  %v186_v1 = vld [vmem:[%s137_s25 + $0x10] sm:$0xff] (%p29_p3)  ;;  %s134_s26 = scalar_lea.vmem (%p29_p3), [#allocation2], %s454_s22 }
  0x10   : > { %v188_v2 = vld [vmem:[%s137_s25 + $0x20] sm:$0xff] (%p29_p3)  ;;  %v190_v3 = vld [vmem:[%s137_s25 + $0x30] sm:$0xff] (%p29_p3)  ;;  %185 = vst [vmem:[%s134_s26] sm:$0xff] (%p29_p3), %v184_v0  ;;  %187 = vst [vmem:[%s134_s26 + $0x8] sm:$0xff] (%p29_p3), %v186_v1 }
  0x11   : > { %v192_v4 = vld [vmem:[%s137_s25 + $0x40] sm:$0xff]  ;;  %v194_v5 = vld [vmem:[%s137_s25 + $0x50] sm:$0xff]  ;;  %189 = vst [vmem:[%s134_s26 + $0x10] sm:$0xff] %v188_v2  ;;  %191 = vst [vmem:[%s134_s26 + $0x18] sm:$0xff] %v190_v3 }
  0x12   : > { %193 = vst [vmem:[%s134_s26 + $0x20] sm:$0xff] %v192_v4  ;;  %195 = vst [vmem:[%s134_s26 + $0x28] sm:$0xff] %v194_v5  ;;  %v196_v6 = vld [vmem:[%s137_s25 + $0x60] sm:$0xff]  ;;  %v198_v7 = vld [vmem:[%s137_s25 + $0x70] sm:$0xff] }
  0x13   : > { %v200_v8 = vld [vmem:[%s137_s25 + $0x80] sm:$0xff]  ;;  %197 = vst [vmem:[%s134_s26 + $0x30] sm:$0xff] %v196_v6  ;;  %199 = vst [vmem:[%s134_s26 + $0x38] sm:$0xff] %v198_v7  ;;  %v202_v9 = vld [vmem:[%s137_s25 + $0x90] sm:$0xff] }
  0x14   : > { %201 = vst [vmem:[%s134_s26 + $0x40] sm:$0xff] %v200_v8  ;;  %203 = vst [vmem:[%s134_s26 + $0x48] sm:$0xff] %v202_v9 }
  0x15 PF: > { %p435_p5 = scmp.ge.s32.totalorder %s519_s14, 1  ;;  %p208_p6 = scmp.lt.s32.totalorder %s519_s14, 3 }
  0x17   : > { %p209_p7 = pnand %p435_p5, %p208_p6 }
  0x18   : > { %s215_s27 = sand.u32 (!%p209_p7), 1, %s511_s12   ;;  %s436_s7 = sshll.u32 (!%p209_p7), %s429_s15, 1 }
  0x19   : > { %212 = sbr.rel (%p209_p7) target bundleno = 252 (0xfc), region = 66  ;;  %p240_p8 = scmp.lt.s32.totalorder (!%p209_p7), %s436_s7, 3 }
  0x1a   : > { %s455_s30 = smul.u32 (!%p209_p7), 80, %s215_s27 }
  0x1c   : > { %s217_s4 = scalar_lea.vmem (!%p209_p7), [#allocation2], %s455_s30 }
  0x1e   : > { %v257_v10 = vld [vmem:[%s602_s2] sm:$0xff]  ;;  %v521_v11 = vmov 0   ;;  %vm313_vm0 = vcmask 654336   ;;  %s608_s7 = smov (!%p240_p8, %s436_s7), 3 }
  0x1f   : > { %349 = vmatprep.mubr.bf16.mxu0 %v521_v11  ;;  %481 = vset.pattern.permute.xlu0 %v521_v11  ;;  %v482_v12 = vld [vmem:[%s217_s4 + $0x44] ss:$8 sps:$4 sm:$0xff]   ;;  %v484_v13 = vld [vmem:[%s217_s4 + $0x40] ss:$8 sps:$4 sm:$0xff]   ;;  %v485_v14 = vld [vmem:[%s217_s4 + $0x34] ss:$8 sps:$4 sm:$0xff]  }
  0x20   : > { %260 = vperm.xlu0 %481, %v257_v10   ;;  %323 = vmatprep.subr.bf16.mxu0 %v482_v12  ;;  %v487_v15 = vld [vmem:[%s217_s4 + $0x30] ss:$8 sps:$4 sm:$0xff]   ;;  %v488_v16 = vld [vmem:[%s217_s4 + $0x24] ss:$8 sps:$4 sm:$0xff]   ;;  %v490_v17 = vld [vmem:[%s217_s4 + $0x20] ss:$8 sps:$4 sm:$0xff]  }
  0x21   : > { %324 = vmatpush1.bf16.msra.mxu0 %v484_v13  ;;  %v491_v18 = vld [vmem:[%s217_s4 + $0x14] ss:$8 sps:$4 sm:$0xff]   ;;  %v493_v19 = vld [vmem:[%s217_s4 + $0x10] ss:$8 sps:$4 sm:$0xff]   ;;  %v494_v20 = vld [vmem:[%s217_s4 + $0x4] ss:$8 sps:$4 sm:$0xff]  }
  0x22   : > { %325 = vmatprep.subr.bf16.mxu0 %v485_v14  ;;  %v496_v21 = vld [vmem:[%s217_s4] ss:$8 sps:$4 sm:$0xff]   ;;  %s437_s8 = sshll.u32 %s608_s7, 2 }
  0x23   : > { %v246_v22 = vld [vmem:[%s601_s1] sm:$0xf]  ;;  %s243_s11 = scalar_lea.vmem %s603_s3, %s437_s8 }
  0x25   : > { %326 = vmatpush1.bf16.msra.mxu0 %v487_v15 }
  0x26   : > { %327 = vmatprep.subr.bf16.mxu0 %v488_v16 }
  0x29   : > { %328 = vmatpush1.bf16.msra.mxu0 %v490_v17 }
  0x2a   : > { %329 = vmatprep.subr.bf16.mxu0 %v491_v18 }
  0x2d   : > { %330 = vmatpush1.bf16.msra.mxu0 %v493_v19 }
  0x2e   : > { %331 = vmatprep.subr.bf16.mxu0 %v494_v20 }
  0x31   : > { %332 = vmatpush1.bf16.msra.mxu0 %v496_v21 }
  0x34   : > { %448 = vmatmul.mubr.msk.bf16.vlgmr.msra.gmra.mxu0 %vm313_vm0, %v246_v22 }
  0x9b   : > { %v261_v23 = vpop.permute.xlu0 %260 }
  0xf4   : > { %v351_v24 = vpop.f32.mrf.mxu0 }
  0xf5   : > { %v352_v26 = vadd.f32 %v351_v24, %v261_v23 }
  0xf6   : > { %v353_v25 = vpop.f32.mrf.mxu0 }
  0xf7   : > { %v354_v27 = vadd.f32 %v353_v25, %v261_v23 }
  0xf8   : > { %v355_v28 = vpop.f32.mrf.mxu0 }
  0xf9   : > { %v453_v29 = vpack.c.bf16 %v354_v27, %v352_v26 }
  0xfa   : > { %v356_v30 = vpop.f32.mrf.mxu0 }
  0xfb   : > { %366 = vst [vmem:[%s243_s11] sm:$0xff] %v453_v29 }
  0xfc PF: > { %p10_p9 = scmp.ge.s32.totalorder %s559_s16, 4   ;;  %s604_s12 = smov %s515_s13 }
  0xfd   : > { %s605_s13 = smov %s568_s19  ;;  %s606_s14 = smov %s559_s16 }
  0xfe   :  { %12 = sbr.rel (!%p10_p9) target bundleno = 2 (0x2), region = 105 }

// kernel: presnet_forward.11
= control target key start
LH: loop header
LB: loop body
LE: loop exit
PB: predicated region body
PF: predicated region fallthrough
CT: control target
= control target key end

     0   :  { %vm62_vm0 = vcmask 1043456   ;;  %v148_v0 = vmov 0.0   ;;  %vm149_vm1 = vmmov 0   ;;  %v150_v3 = vmov 0   ;;  %s195_s0 = inlined_call_operand.vmem [shape: bf16[72,128], index: 0, kind: input, shape index: {}]   ;;  %s196_s2 = inlined_call_operand.vmem [shape: f32[8,1], index: 2, kind: input, shape index: {}]   ;;  %s197_s1 = inlined_call_operand.vmem [shape: bf16[8,72], index: 1, kind: input, shape index: {}]   ;;  %s198_s3 = inlined_call_operand.vmem [shape: bf16[8,128], index: 3, kind: output, shape index: {}]  }
   0x1   :  { %125 = vmatprep.subr.bf16.mxu0 %v148_v0  ;;  %v143_v1 = vld [vmem:[%s195_s0 + $0x20] ss:$0 sps:$4 sm:$0xff]   ;;  %135 = vmatprep.mubr.msk.bf16.mxu0 %vm149_vm1, %v148_v0  ;;  %v144_v4 = vld [vmem:[%s195_s0 + $0x18] sm:$0xff]   ;;  %v145_v6 = vld [vmem:[%s195_s0 + $0x10] sm:$0xff]   ;;  %vm58_vm2 = vcmask 588800  }
   0x2   :  { %v64_v2 = vsel %vm62_vm0, %v143_v1, 0  ;;  %142 = vset.pattern.permute.xlu0 %v150_v3  ;;  %v25_v5 = vld [vmem:[%s196_s2] sm:$0xff]  ;;  %v146_v7 = vld [vmem:[%s195_s0 + $0x8] sm:$0xff]  }
   0x3   :  { %126 = vmatpush3.bf16.msra.mxu0 %v64_v2  ;;  %28 = vperm.xlu0 %142, %v25_v5   ;;  %v147_v8 = vld [vmem:[%s195_s0] sm:$0xff]  }
   0x4   :  { %127 = vmatprep.subr.bf16.mxu0 %v148_v0  ;;  %v15_v9 = vld [vmem:[%s197_s1] sm:$0xf] }
   0x7   :  { %128 = vmatpush3.bf16.msra.mxu0 %v144_v4 }
   0x8   :  { %129 = vmatprep.subr.bf16.mxu0 %v148_v0 }
   0xb   :  { %130 = vmatpush3.bf16.msra.mxu0 %v145_v6 }
   0xc   :  { %131 = vmatprep.subr.bf16.mxu0 %v148_v0 }
   0xf   :  { %132 = vmatpush3.bf16.msra.mxu0 %v146_v7 }
  0x10   :  { %133 = vmatprep.subr.bf16.mxu0 %v148_v0 }
  0x13   :  { %134 = vmatpush3.bf16.msra.mxu0 %v147_v8 }
  0x16   :  { %136 = vmatmul.mubr.msk.bf16.vlgmr.msra.gmra.mxu0 %vm58_vm2, %v15_v9 }
  0x7e   :  { %v29_v10 = vpop.permute.xlu0 %28 }
  0xd6   :  { %v100_v11 = vpop.f32.mrf.mxu0 }
  0xd7   :  { %v101_v12 = vadd.f32 %v100_v11, %v29_v10 }
  0xd8   :  { %v137_v13 = vpop.f32.mrf.mxu0 }
  0xd9   :  { %v106_v14 = vmax.f32 %v101_v12, 0.0 }
  0xda   :  { %v103_v15 = vpop.f32.mrf.mxu0 }
  0xdb   :  { %v107_v16 = vpack.c.bf16 %v106_v14, %v106_v14 }
  0xdc   :  { %v138_v17 = vpop.f32.mrf.mxu0 }
  0xdd   :  { %108 = vst [vmem:[%s198_s3] sm:$0xf] %v107_v16 }

// kernel: presnet_forward.12
= control target key start
LH: loop header
LB: loop body
LE: loop exit
PB: predicated region body
PF: predicated region fallthrough
CT: control target
= control target key end

     0   :  { %v147_v0 = vmov 0.0   ;;  %vm148_vm0 = vmmov 0   ;;  %v149_v2 = vmov 0   ;;  %vm62_vm1 = vcmask 654336   ;;  %s194_s0 = inlined_call_operand.vmem [shape: bf16[80,128], index: 0, kind: input, shape index: {}]   ;;  %s195_s2 = inlined_call_operand.vmem [shape: f32[8,1], index: 2, kind: input, shape index: {}]   ;;  %s196_s1 = inlined_call_operand.vmem [shape: bf16[8,80], index: 1, kind: input, shape index: {}]   ;;  %s197_s3 = inlined_call_operand.vmem [shape: bf16[8,128], index: 3, kind: output, shape index: {}]  }
   0x1   :  { %124 = vmatprep.subr.bf16.mxu0 %v147_v0  ;;  %v142_v1 = vld [vmem:[%s194_s0 + $0x20] sm:$0xff]   ;;  %134 = vmatprep.mubr.msk.bf16.mxu0 %vm148_vm0, %v147_v0  ;;  %v143_v3 = vld [vmem:[%s194_s0 + $0x18] sm:$0xff]   ;;  %v144_v5 = vld [vmem:[%s194_s0 + $0x10] sm:$0xff]  }
   0x2   :  { %141 = vset.pattern.permute.xlu0 %v149_v2  ;;  %125 = vmatpush3.bf16.msra.mxu0 %v142_v1  ;;  %v26_v4 = vld [vmem:[%s195_s2] sm:$0xff]  ;;  %v145_v6 = vld [vmem:[%s194_s0 + $0x8] sm:$0xff]  }
   0x3   :  { %126 = vmatprep.subr.bf16.mxu0 %v147_v0  ;;  %29 = vperm.xlu0 %141, %v26_v4   ;;  %v146_v7 = vld [vmem:[%s194_s0] sm:$0xff]  }
   0x4   :  { %v15_v8 = vld [vmem:[%s196_s1] sm:$0xf] }
   0x6   :  { %127 = vmatpush3.bf16.msra.mxu0 %v143_v3 }
   0x7   :  { %128 = vmatprep.subr.bf16.mxu0 %v147_v0 }
   0xa   :  { %129 = vmatpush3.bf16.msra.mxu0 %v144_v5 }
   0xb   :  { %130 = vmatprep.subr.bf16.mxu0 %v147_v0 }
   0xe   :  { %131 = vmatpush3.bf16.msra.mxu0 %v145_v6 }
   0xf   :  { %132 = vmatprep.subr.bf16.mxu0 %v147_v0 }
  0x12   :  { %133 = vmatpush3.bf16.msra.mxu0 %v146_v7 }
  0x15   :  { %135 = vmatmul.mubr.msk.bf16.vlgmr.msra.gmra.mxu0 %vm62_vm1, %v15_v8 }
  0x7e   :  { %v30_v9 = vpop.permute.xlu0 %29 }
  0xd5   :  { %v100_v10 = vpop.f32.mrf.mxu0 }
  0xd6   :  { %v101_v11 = vadd.f32 %v100_v10, %v30_v9 }
  0xd7   :  { %v136_v12 = vpop.f32.mrf.mxu0 }
  0xd8   :  { %v106_v13 = vpack.c.bf16 %v101_v11, %v101_v11 }
  0xd9   :  { %v103_v14 = vpop.f32.mrf.mxu0 }
  0xda   :  { %107 = vst [vmem:[%s197_s3] sm:$0xf] %v106_v13 }
  0xdb   :  { %v137_v15 = vpop.f32.mrf.mxu0 }

// kernel: presnet_forward.13
= control target key start
LH: loop header
LB: loop body
LE: loop exit
PB: predicated region body
PF: predicated region fallthrough
CT: control target
= control target key end

     0   :  { %vm74_vm0 = vcmask 1043456   ;;  %v177_v0 = vmov 0.0   ;;  %vm178_vm1 = vmmov 0   ;;  %v179_v3 = vmov 0   ;;  %s230_s0 = inlined_call_operand.vmem [shape: bf16[72,32], index: 0, kind: input, shape index: {}]   ;;  %s231_s2 = inlined_call_operand.vmem [shape: f32[16,1], index: 2, kind: input, shape index: {}]   ;;  %s232_s1 = inlined_call_operand.vmem [shape: bf16[16,72], index: 1, kind: input, shape index: {}]   ;;  %s233_s3 = inlined_call_operand.vmem [shape: bf16[16,32], index: 3, kind: output, shape index: {}]  }
   0x1   :  { %153 = vmatprep.subr.bf16.mxu0 %v177_v0  ;;  %v171_v1 = vld [vmem:[%s230_s0 + $0x20] ss:$0 sps:$4 sm:$0xff]   ;;  %163 = vmatprep.mubr.msk.bf16.mxu0 %vm178_vm1, %v177_v0  ;;  %v172_v4 = vld [vmem:[%s230_s0 + $0x18] sm:$0xff]   ;;  %v173_v6 = vld [vmem:[%s230_s0 + $0x10] sm:$0xff]   ;;  %vm70_vm2 = vcmask 588800   ;;  %vm129_vm3 = vcmask 257024  }
   0x2   :  { %v76_v2 = vsel %vm74_vm0, %v171_v1, 0  ;;  %170 = vset.pattern.permute.xlu0 %v179_v3  ;;  %v26_v5 = vld [vmem:[%s231_s2] sm:$0xff]  ;;  %v27_v7 = vld [vmem:[%s231_s2 + $0x8] sm:$0xff] }
   0x3   :  { %154 = vmatpush3.bf16.msra.mxu0 %v76_v2  ;;  %30 = vperm.xlu0 %170, %v26_v5   ;;  %v174_v8 = vld [vmem:[%s230_s0 + $0x8] sm:$0xff]   ;;  %v175_v9 = vld [vmem:[%s230_s0] sm:$0xff]  }
   0x4   :  { %155 = vmatprep.subr.bf16.mxu0 %v177_v0  ;;  %v176_v10 = vld [vmem:[%s232_s1] sm:$0xff]  }
   0x7   :  { %156 = vmatpush3.bf16.msra.mxu0 %v172_v4  ;;  %35 = vperm.xlu0 %170, %v27_v7  }
   0x8   :  { %157 = vmatprep.subr.bf16.mxu0 %v177_v0 }
   0xb   :  { %158 = vmatpush3.bf16.msra.mxu0 %v173_v6 }
   0xc   :  { %159 = vmatprep.subr.bf16.mxu0 %v177_v0 }
   0xf   :  { %160 = vmatpush3.bf16.msra.mxu0 %v174_v8 }
  0x10   :  { %161 = vmatprep.subr.bf16.mxu0 %v177_v0 }
  0x13   :  { %162 = vmatpush3.bf16.msra.mxu0 %v175_v9 }
  0x16   :  { %164 = vmatmul.mubr.msk.bf16.vlgmr.msra.gmra.mxu0 %vm70_vm2, %v176_v10 }
  0x7e   :  { %v31_v11 = vpop.permute.xlu0 %30 }
  0x82   :  { %v36_v16 = vpop.permute.xlu0 %35 }
  0xd6   :  { %v112_v12 = vpop.f32.mrf.mxu0 }
  0xd7   :  { %v113_v13 = vadd.f32 %v112_v12, %v31_v11 }
  0xd8   :  { %v165_v14 = vpop.f32.mrf.mxu0 }
  0xd9   :  { %v119_v15 = vmax.f32 %v113_v13, 0.0 }
  0xda   :  { %v115_v17 = vpop.f32.mrf.mxu0 }
  0xdb   :  { %v145_v18 = vpack.c.bf16 %v119_v15, %v119_v15  ;;  %v116_v19 = vadd.f32 %v115_v17, %v36_v16 }
  0xdc   :  { %v166_v20 = vpop.f32.mrf.mxu0 }
  0xdd   :  { %130 = vst.msk [vmem:[%s233_s3] sm:$0xf] %vm129_vm3, %v145_v18  ;;  %v120_v21 = vmax.f32 %v116_v19, 0.0 }
  0xdf   :  { %v146_v22 = vpack.c.bf16 %v120_v21, %v120_v21 }
  0xe1   :  { %131 = vst.msk [vmem:[%s233_s3 + $0x4] sm:$0xf] %vm129_vm3, %v146_v22 }

// kernel: presnet_forward.15
= control target key start
LH: loop header
LB: loop body
LE: loop exit
PB: predicated region body
PF: predicated region fallthrough
CT: control target
= control target key end

     0   :  { %v221_v0 = vmov 0   ;;  %v222_v5 = vmov 0.0   ;;  %vm223_vm0 = vmmov 0   ;;  %vm77_vm1 = vcmask 261120   ;;  %s300_s2 = inlined_call_operand.vmem [shape: f32[16,1], index: 2, kind: input, shape index: {}]   ;;  %s301_s1 = inlined_call_operand.vmem [shape: f32[16,1], index: 1, kind: input, shape index: {}]   ;;  %s302_s3 = inlined_call_operand.vmem [shape: bf16[32,2], index: 3, kind: input, shape index: {}]   ;;  %s303_s5 = inlined_call_operand.vmem [shape: f32[5,1], index: 5, kind: input, shape index: {}]   ;;  %s304_s0 = inlined_call_operand.vmem [shape: bf16[16,32], index: 0, kind: input, shape index: {}]   ;;  %s305_s6 = inlined_call_operand.vmem [shape: f32[16,2], index: 6, kind: output, shape index: {0}]   ;;  %s306_s4 = inlined_call_operand.vmem [shape: bf16[5,16], index: 4, kind: input, shape index: {}]   ;;  %s307_s7 = inlined_call_operand.vmem [shape: f32[5,2], index: 7, kind: output, shape index: {1}]  }
   0x1   :  { %218 = vset.pattern.permute.xlu1 %v221_v0  ;;  %217 = vset.pattern.permute.xlu0 %v221_v0  ;;  %v44_v1 = vld [vmem:[%s300_s2] sm:$0xff]  ;;  %v45_v3 = vld [vmem:[%s300_s2 + $0x8] sm:$0xff]  ;;  %vm122_vm2 = vcmask 15360   ;;  %vm133_vm3 = vcmask 130048   ;;  %vm177_vm4 = vcmask 12288  }
   0x2   :  { %v30_v2 = vld [vmem:[%s301_s1] sm:$0xff]  ;;  %48 = vperm.xlu1 %218, %v44_v1   ;;  %v31_v4 = vld [vmem:[%s301_s1 + $0x8] sm:$0xff]  ;;  %200 = vmatprep.subr.bf16.mxu0 %v222_v5 }
   0x3   :  { %34 = vperm.xlu0 %217, %v30_v2   ;;  %v219_v6 = vld [vmem:[%s302_s3 + $0x8] sm:$0xff]   ;;  %208 = vmatprep.subr.bf16.mxu1 %v222_v5  ;;  %v220_v7 = vld [vmem:[%s302_s3] sm:$0xff]  }
   0x4   :  { %201 = vmatpush3.bf16.msra.mxu0 %v219_v6  ;;  %v127_v8 = vld [vmem:[%s303_s5] sm:$0x1f]  ;;  %204 = vmatprep.mubr.msk.bf16.mxu0 %vm223_vm0, %v222_v5 }
   0x5   :  { %202 = vmatprep.subr.bf16.mxu0 %v222_v5  ;;  %210 = vmatprep.mubr.msk.bf16.mxu1 %vm223_vm0, %v222_v5  ;;  %v192_v9 = vld [vmem:[%s304_s0] sm:$0xff]  }
   0x6   :  { %53 = vperm.xlu1 %218, %v45_v3   ;;  %v193_v10 = vunpack.c.l.bf16 %v192_v9  ;;  %v194_v14 = vunpack.c.h.bf16 %v192_v9  ;;  %v125_v28 = vld [vmem:[%s306_s4] sm:$0x7] }
   0x7   :  { %39 = vperm.xlu0 %217, %v31_v4  }
   0x8   :  { %203 = vmatpush3.bf16.msra.mxu0 %v220_v7 }
   0xb   :  { %130 = vperm.xlu0 %217, %v127_v8  }
  0x7d   :  { %v49_v11 = vpop.permute.xlu1 %48 }
  0x7e   :  { %v35_v12 = vpop.permute.xlu0 %34 }
  0x7f   :  { %v42_v13 = vmul.f32 %v193_v10, %v35_v12 }
  0x81   :  { %v56_v16 = vadd.f32 %v49_v11, %v42_v13  ;;  %v54_v18 = vpop.permute.xlu1 %53 }
  0x82   :  { %v40_v15 = vpop.permute.xlu0 %39 }
  0x83   :  { %v43_v17 = vmul.f32 %v194_v14, %v40_v15  ;;  %v58_v20 = vmax.f32 %v56_v16, 0.0 }
  0x85   :  { %v57_v19 = vadd.f32 %v54_v18, %v43_v17 }
  0x86   :  { %v131_v29 = vpop.permute.xlu0 %130 }
  0x87   :  { %v59_v21 = vmax.f32 %v57_v19, 0.0 }
  0x89   :  { %v60_v22 = vpack.c.bf16 %v59_v21, %v58_v20 }
  0x8b   :  { %205 = vmatmul.mubr.msk.bf16.vlgmr.msra.gmra.mxu0 %vm77_vm1, %v60_v22 }
 0x14b   :  { %v115_v23 = vpop.f32.mrf.mxu0 }
 0x14c   :  { %123 = vst.msk [vmem:[%s305_s6] sm:$0xff] %vm122_vm2, %v115_v23 }
 0x14d   :  { %v206_v24 = vpop.f32.mrf.mxu0 }
 0x14f   :  { %v118_v25 = vpop.f32.mrf.mxu0 }
 0x150   :  { %124 = vst.msk [vmem:[%s305_s6 + $0x8] sm:$0xff] %vm122_vm2, %v118_v25  ;;  %v126_v26 = vpack.c.bf16 %v118_v25, %v115_v23 }
 0x151   :  { %v207_v27 = vpop.f32.mrf.mxu0 }
 0x152   :  { %209 = vmatpush3.bf16.msra.mxu1 %v126_v26 }
 0x155   :  { %211 = vmatmul.mubr.msk.bf16.vlgmr.msra.gmra.mxu1 %vm133_vm3, %v125_v28 }
 0x215   :  { %v171_v30 = vpop.f32.mrf.mxu1 }
 0x216   :  { %v172_v31 = vadd.f32 %v171_v30, %v131_v29 }
 0x217   :  { %v212_v32 = vpop.f32.mrf.mxu1 }
 0x218   :  { %178 = vst.msk [vmem:[%s307_s7] sm:$0x1f] %vm177_vm4, %v172_v31 }
 0x219   :  { %v174_v33 = vpop.f32.mrf.mxu1 }
 0x21b   :  { %v213_v34 = vpop.f32.mrf.mxu1 }

// kernel: presnet_forward.14
= control target key start
LH: loop header
LB: loop body
LE: loop exit
PB: predicated region body
PF: predicated region fallthrough
CT: control target
= control target key end

     0   :  { %v210_v0 = vmov 0   ;;  %vm114_vm0 = vcmask 195584   ;;  %vm118_vm1 = vcmask 1043456   ;;  %vm171_vm2 = vcmask 257024   ;;  %s279_s0 = inlined_call_operand.vmem [shape: bf16[152,32], index: 0, kind: input, shape index: {}]   ;;  %s280_s1 = inlined_call_operand.vmem [shape: bf16[16,152], index: 1, kind: input, shape index: {}]   ;;  %s281_s2 = inlined_call_operand.vmem [shape: f32[16,1], index: 2, kind: input, shape index: {}]   ;;  %s282_s3 = inlined_call_operand.vmem [shape: bf16[16,32], index: 3, kind: output, shape index: {}]  }
   0x1   :  { %122 = vmatprep.subr.bf16.mxu0 %v210_v0  ;;  %v197_v1 = vld [vmem:[%s279_s0 + $0x38] sm:$0xff]   ;;  %196 = vset.pattern.permute.xlu0 %v210_v0  ;;  %v198_v2 = vld [vmem:[%s279_s0 + $0x30] sm:$0xff]   ;;  %v199_v3 = vld [vmem:[%s279_s0 + $0x28] sm:$0xff]  }
   0x2   :  { %123 = vmatpush1.bf16.msra.mxu0 %v197_v1  ;;  %v200_v4 = vld [vmem:[%s279_s0 + $0x20] sm:$0xff]   ;;  %v37_v7 = vld [vmem:[%s281_s2 + $0x8] sm:$0xff]  ;;  %v201_v8 = vld [vmem:[%s279_s0 + $0x18] sm:$0xff]  }
   0x3   :  { %124 = vmatprep.subr.bf16.mxu0 %v210_v0  ;;  %v209_v5 = vld [vmem:[%s280_s1 + $0x4] ss:$8 sps:$4 sm:$0xff]   ;;  %v202_v9 = vld [vmem:[%s279_s0 + $0x10] sm:$0xff]   ;;  %v205_v12 = vld [vmem:[%s279_s0 + $0x48] ss:$0 sps:$4 sm:$0xff]  }
   0x4   :  { %v36_v6 = vld [vmem:[%s281_s2] sm:$0xff]  ;;  %190 = vmatprep.mubr.msk.bf16.mxu0 %vm114_vm0, %v209_v5  ;;  %v203_v10 = vld [vmem:[%s279_s0 + $0x8] sm:$0xff]   ;;  %v120_v13 = vsel %vm118_vm1, %v205_v12, 0 }
   0x5   :  { %40 = vperm.xlu0 %196, %v36_v6   ;;  %v204_v11 = vld [vmem:[%s279_s0] sm:$0xff]  }
   0x6   :  { %125 = vmatpush1.bf16.msra.mxu0 %v198_v2  ;;  %v206_v14 = vld [vmem:[%s279_s0 + $0x40] sm:$0xff]  }
   0x7   :  { %126 = vmatprep.subr.bf16.mxu0 %v210_v0  ;;  %v207_v15 = vld [vmem:[%s280_s1] ss:$8 sps:$4 sm:$0xff]  }
   0x9   :  { %45 = vperm.xlu0 %196, %v37_v7  }
   0xa   :  { %127 = vmatpush1.bf16.msra.mxu0 %v199_v3 }
   0xb   :  { %128 = vmatprep.subr.bf16.mxu0 %v210_v0 }
   0xe   :  { %129 = vmatpush1.bf16.msra.mxu0 %v200_v4 }
   0xf   :  { %130 = vmatprep.subr.bf16.mxu0 %v210_v0 }
  0x12   :  { %131 = vmatpush1.bf16.msra.mxu0 %v201_v8 }
  0x13   :  { %132 = vmatprep.subr.bf16.mxu0 %v210_v0 }
  0x16   :  { %133 = vmatpush1.bf16.msra.mxu0 %v202_v9 }
  0x17   :  { %134 = vmatprep.subr.bf16.mxu0 %v210_v0 }
  0x1a   :  { %135 = vmatpush1.bf16.msra.mxu0 %v203_v10 }
  0x1b   :  { %136 = vmatprep.subr.bf16.mxu0 %v210_v0 }
  0x1e   :  { %137 = vmatpush1.bf16.msra.mxu0 %v204_v11 }
  0x1f   :  { %150 = vmatprep.subr.bf16.mxu0 %v210_v0 }
  0x22   :  { %151 = vmatpush2.bf16.msra.mxu0 %v120_v13 }
  0x23   :  { %152 = vmatprep.subr.bf16.mxu0 %v210_v0 }
  0x26   :  { %153 = vmatpush2.bf16.msra.mxu0 %v206_v14 }
  0x29   :  { %155 = vmatmul.mubr.bf16.vlgmr.msra.gmra.mxu0 %v207_v15 }
  0x80   :  { %v41_v16 = vpop.permute.xlu0 %40 }
  0x84   :  { %v46_v21 = vpop.permute.xlu0 %45 }
  0xe9   :  { %v156_v17 = vpop.f32.mrf.mxu0 }
  0xea   :  { %v157_v18 = vadd.f32 %v156_v17, %v41_v16 }
  0xeb   :  { %v158_v19 = vpop.f32.mrf.mxu0 }
  0xec   :  { %v193_v20 = vpack.c.bf16 %v157_v18, %v157_v18 }
  0xed   :  { %v159_v22 = vpop.f32.mrf.mxu0 }
  0xee   :  { %172 = vst.msk [vmem:[%s282_s3] sm:$0xf] %vm171_vm2, %v193_v20  ;;  %v160_v23 = vadd.f32 %v159_v22, %v46_v21 }
  0xef   :  { %v161_v24 = vpop.f32.mrf.mxu0 }
  0xf0   :  { %v194_v25 = vpack.c.bf16 %v160_v23, %v160_v23 }
  0xf2   :  { %173 = vst.msk [vmem:[%s282_s3 + $0x4] sm:$0xf] %vm171_vm2, %v194_v25 }

</bundles_post_ra>
